<compile_context>
chip_gen: v6e
topology: v6e:2x2x1
jax: 0.10.0
libtpu: 0.0.40
codegen_flags: <defaults>
</compile_context>

<pallas_src>
import numpy as np
import jax
import jax.numpy as jnp
from jax import lax
from jax.experimental import pallas as pl
from jax.experimental.pallas import tpu as pltpu

OC = 16  # conv output channels (hardcoded by the PyTorch module)


# ----------------------------------------------------------------------------
# Packed-slab-C row offsets (shared by prepare_params and the kernel wrapper).
# ----------------------------------------------------------------------------
def _slabC_offsets(flat, latent, hidden):
    off = {}
    off["w1f"] = 0                       # (flat,  hidden)  feature rows of fc1
    off["w1z"] = flat                    # (latent, hidden) latent rows of fc1
    off["w2"] = flat + latent            # (hidden, hidden)
    off["w4"] = flat + latent + hidden   # (flat,  hidden)  fc4, lane-padded
    off["b1"] = off["w4"] + flat         # (1, hidden)
    off["b2"] = off["b1"] + 1            # (1, hidden)
    off["b4"] = off["b2"] + 1            # (1, hidden)      lane-padded
    off["rows"] = off["b4"] + 1
    return off


# ----------------------------------------------------------------------------
# One-time repack of PyTorch-layout params into 3 kernel-friendly slabs.
# ----------------------------------------------------------------------------
def prepare_params(params, H, W):
    conv_w = np.asarray(params["conv_w"], np.float32)          # (3, 3, C, OC)
    C = conv_w.shape[2]
    Hp, Wp = H // 2, W // 2
    flat = OC * Hp * Wp
    hidden = int(params["w2"].shape[0])
    latent = int(params["w4"].shape[1])
    assert latent <= hidden, "latent rows are lane-padded into the hidden-wide slab"

    # Output x-column permutation: even columns first, then odd columns, so the
    # 2x2 maxpool x-reduction is max(lanes[:Wp*OC], lanes[Wp*OC:]) in-kernel.
    perm = list(range(0, W, 2)) + list(range(1, W, 2))

    # Slab A (W*OC lanes): 3 banded conv weights (one per kernel row) + bias row.
    KY = W * C
    wA = np.zeros((3 * KY + 1, W * OC), np.float32)
    for ky in range(3):
        base = ky * KY
        for p, xo in enumerate(perm):
            for kx in range(3):
                xi = xo + kx - 1
                if 0 <= xi < W:                                  # "same" x padding
                    wA[base + xi * C: base + (xi + 1) * C,
                       p * OC:(p + 1) * OC] = conv_w[ky, kx]
    wA[3 * KY, :] = np.tile(np.asarray(params["conv_b"], np.float32), W)

    # Slab B (flat lanes): fc_decoder weight + bias.
    wB = np.zeros((hidden + 1, flat), np.float32)
    wB[:hidden] = np.asarray(params["w3"], np.float32)
    wB[hidden] = np.asarray(params["b3"], np.float32)

    # Slab C (hidden lanes): w1 (feature rows permuted NCHW -> (hp, wp, oc),
    # latent rows split off), w2, lane-padded w4, and biases b1/b2/b4.
    off = _slabC_offsets(flat, latent, hidden)
    wC = np.zeros((off["rows"], hidden), np.float32)
    w1 = np.asarray(params["w1"], np.float32)                    # (flat+latent, hidden)
    w1f = (w1[:flat].reshape(OC, Hp, Wp, hidden)
           .transpose(1, 2, 0, 3).reshape(flat, hidden))
    wC[off["w1f"]:off["w1f"] + flat] = w1f
    wC[off["w1z"]:off["w1z"] + latent] = w1[flat:]
    wC[off["w2"]:off["w2"] + hidden] = np.asarray(params["w2"], np.float32)
    wC[off["w4"]:off["w4"] + flat, :latent] = np.asarray(params["w4"], np.float32)
    wC[off["b1"]] = np.asarray(params["b1"], np.float32)
    wC[off["b2"]] = np.asarray(params["b2"], np.float32)
    wC[off["b4"], :latent] = np.asarray(params["b4"], np.float32)

    return dict(wA=jnp.asarray(wA), wB=jnp.asarray(wB), wC=jnp.asarray(wC))


# ----------------------------------------------------------------------------
# Fused forward: one pallas_call, zero XLA glue kernels.
# ----------------------------------------------------------------------------
def internal_model_forward(image_nhwc, latent_z, kp):
    """image_nhwc: (N, H, W, C) f32 (obs.image), latent_z: (latent_dim,) f32."""
    N, H, W, C = image_nhwc.shape
    assert H % 2 == 0 and W % 2 == 0
    Hp, Wp = H // 2, W // 2
    NH, WC = N * H, W * C
    KY = W * C                 # rows per conv-kernel-row tap in slab A
    LANES = W * OC             # conv output lanes
    HALF = Wp * OC             # pooled output lanes
    flat = OC * Hp * Wp
    hidden = kp["wC"].shape[1]
    latent = latent_z.shape[0]
    off = _slabC_offsets(flat, latent, hidden)
    assert kp["wA"].shape == (3 * KY + 1, LANES)
    assert kp["wB"].shape == (hidden + 1, flat)
    assert kp["wC"].shape[0] == off["rows"]

    # Free reshapes of contiguous data (no pad / concat / transpose glue).
    x2d = image_nhwc.astype(jnp.float32).reshape(NH, WC)
    zrow = latent_z.astype(jnp.float32).reshape(1, latent)

    def kernel(x_ref, z_ref, wA_ref, wB_ref, wC_ref, o_ref):
        # ---- 3x3 "same" conv as 3 banded matmuls (rows = (n, y)) ----
        x = x_ref[...]                                           # (NH, WC)
        yid = lax.broadcasted_iota(jnp.int32, (NH, 1), 0) % H
        x_dn = jnp.where(yid > 0, pltpu.roll(x, 1, axis=0), 0.0)           # row y-1
        x_up = jnp.where(yid < H - 1, pltpu.roll(x, NH - 1, axis=0), 0.0)  # row y+1

        conv = (jnp.dot(x_dn, wA_ref[0 * KY:1 * KY, :], preferred_element_type=jnp.float32)
                + jnp.dot(x,   wA_ref[1 * KY:2 * KY, :], preferred_element_type=jnp.float32)
                + jnp.dot(x_up, wA_ref[2 * KY:3 * KY, :], preferred_element_type=jnp.float32))
        conv = jnp.maximum(conv + wA_ref[3 * KY:3 * KY + 1, :], 0.0)  # relu(conv+b)

        # ---- 2x2 maxpool ----
        # x-pairs were routed to lane halves by the weight column permutation.
        mx = jnp.maximum(conv[:, :HALF], conv[:, HALF:])         # (NH, HALF)
        # y-pairs are adjacent rows; valid pooled rows are the even ones.
        pooled = jnp.maximum(mx, pltpu.roll(mx, NH - 1, axis=0))

        # ---- fc_encoder layer 1: flatten folded into accumulated dots ----
        hz = jnp.dot(z_ref[...], wC_ref[off["w1z"]:off["w1z"] + latent, :],
                     preferred_element_type=jnp.float32)          # (1, hidden)
        hz = hz + wC_ref[off["b1"]:off["b1"] + 1, :]
        acc = jnp.zeros((N, hidden), jnp.float32)
        for hp in range(Hp):
            rows = jnp.concatenate(
                [pooled[n * H + 2 * hp: n * H + 2 * hp + 1, :] for n in range(N)],
                axis=0)                                           # (N, HALF)
            acc = acc + jnp.dot(
                rows,
                wC_ref[off["w1f"] + hp * HALF: off["w1f"] + (hp + 1) * HALF, :],
                preferred_element_type=jnp.float32)
        h = jnp.maximum(acc + hz, 0.0)                            # (N, hidden)

        # ---- fc_encoder layer 2 / fc_decoder / fc_decoder_z ----
        h = jnp.maximum(
            jnp.dot(h, wC_ref[off["w2"]:off["w2"] + hidden, :],
                    preferred_element_type=jnp.float32)
            + wC_ref[off["b2"]:off["b2"] + 1, :], 0.0)
        d = jnp.maximum(
            jnp.dot(h, wB_ref[0:hidden, :], preferred_element_type=jnp.float32)
            + wB_ref[hidden:hidden + 1, :], 0.0)                  # (N, flat)
        zf = jnp.maximum(
            jnp.dot(d, wC_ref[off["w4"]:off["w4"] + flat, :],
                    preferred_element_type=jnp.float32)
            + wC_ref[off["b4"]:off["b4"] + 1, :], 0.0)            # (N, hidden)
        o_ref[...] = zf[:, :latent]

    vmem = pl.BlockSpec(memory_space=pltpu.MemorySpace.VMEM)
    flops = 2 * (3 * NH * WC * LANES                 # conv banded matmuls
                 + N * (flat + latent) * hidden      # fc1 (+ latent rows)
                 + N * hidden * hidden               # fc2
                 + N * hidden * flat                 # fc3
                 + N * flat * hidden)                # fc4 (lane-padded)
    bytes_accessed = 4 * int(x2d.size + zrow.size + kp["wA"].size
                             + kp["wB"].size + kp["wC"].size + N * latent)
    return pl.pallas_call(
        kernel,
        out_shape=jax.ShapeDtypeStruct((N, latent), jnp.float32),
        in_specs=[vmem] * 5,
        out_specs=vmem,
        cost_estimate=pl.CostEstimate(flops=int(flops), transcendentals=0,
                                      bytes_accessed=bytes_accessed),
    )(x2d, zrow, kp["wA"], kp["wB"], kp["wC"])


# ----------------------------------------------------------------------------
# Deterministic parameter init (shapes follow InternalModel.__init__)
# ----------------------------------------------------------------------------
def init_params(key, C, H, W, latent_dim, hidden):
    flat = OC * (H // 2) * (W // 2)
    ks = jax.random.split(key, 6)

    def dense(k, fan_in, fan_out):
        return (jax.random.normal(k, (fan_in, fan_out), jnp.float32)
                / np.float32(np.sqrt(fan_in)))

    return dict(
        conv_w=jax.random.normal(ks[0], (3, 3, C, OC), jnp.float32) / np.float32(np.sqrt(9 * C)),
        conv_b=0.1 * jax.random.normal(ks[1], (OC,), jnp.float32),
        w1=dense(ks[2], flat + latent_dim, hidden), b1=jnp.full((hidden,), 0.01, jnp.float32),
        w2=dense(ks[3], hidden, hidden),            b2=jnp.full((hidden,), 0.01, jnp.float32),
        w3=dense(ks[4], hidden, flat),              b3=jnp.full((flat,), 0.01, jnp.float32),
        w4=dense(ks[5], flat, latent_dim),          b4=jnp.full((latent_dim,), 0.01, jnp.float32),
    )


# ----------------------------------------------------------------------------
# Pure-JAX reference (same semantics as the PyTorch module), high precision.
# ----------------------------------------------------------------------------
def reference_forward(image_nhwc, latent_z, params):
    hi = lax.Precision.HIGHEST
    conv = lax.conv_general_dilated(
        image_nhwc, params["conv_w"], window_strides=(1, 1), padding="SAME",
        dimension_numbers=("NHWC", "HWIO", "NHWC"), precision=hi)
    conv = jax.nn.relu(conv + params["conv_b"][None, None, None, :])
    pooled = lax.reduce_window(conv, -jnp.inf, lax.max,
                               (1, 2, 2, 1), (1, 2, 2, 1), "VALID")
    N = pooled.shape[0]
    feat = jnp.transpose(pooled, (0, 3, 1, 2)).reshape(N, -1)     # NCHW flatten
    z_b = jnp.broadcast_to(latent_z[None, :], (N, latent_z.shape[0]))
    x = jnp.concatenate([feat, z_b], axis=1)
    x = jax.nn.relu(jnp.dot(x, params["w1"], precision=hi) + params["b1"])
    x = jax.nn.relu(jnp.dot(x, params["w2"], precision=hi) + params["b2"])
    x = jax.nn.relu(jnp.dot(x, params["w3"], precision=hi) + params["b3"])
    x = jax.nn.relu(jnp.dot(x, params["w4"], precision=hi) + params["b4"])
    return x


if __name__ == "__main__":
    # image_shape = (H, W, C) as passed to InternalModel.__init__
    H, W, C = 16, 16, 4
    latent_dim, hidden_size = 8, 32
    N = 2

    key = jax.random.PRNGKey(0)
    k_img, k_z, k_p = jax.random.split(key, 3)
    image = jax.random.normal(k_img, (N, H, W, C), jnp.float32)   # obs.image (NHWC)
    latent_z = jax.random.normal(k_z, (latent_dim,), jnp.float32)
    params = init_params(k_p, C, H, W, latent_dim, hidden_size)
    kparams = prepare_params(params, H, W)                        # one-time weight repack

    fwd = jax.jit(internal_model_forward)
    out = jax.block_until_ready(fwd(image, latent_z, kparams))

    ref = reference_forward(image, latent_z, params)
    # Tightened 4x vs. v1.  Not 1e-5 because MXU f32 matmuls may use bf16
    # multi-pass arithmetic whose rounding differs from the HIGHEST-precision
    # XLA reference at the ~1e-3 level; 5e-3 still catches any layout or
    # permutation bug (those produce O(1) errors).
    np.testing.assert_allclose(np.asarray(out), np.asarray(ref), rtol=5e-3, atol=5e-3)
    assert out.shape == (N, latent_dim)
    print("KERNEL_OK")
</pallas_src>

<mosaic_0001>
module attributes {stable_mosaic.version = 11 : i64} {
  func.func @kernel(%arg0: memref<32x64xf32, #tpu.memory_space<vmem>>, %arg1: memref<1x8xf32, #tpu.memory_space<vmem>>, %arg2: memref<193x256xf32, #tpu.memory_space<vmem>>, %arg3: memref<33x1024xf32, #tpu.memory_space<vmem>>, %arg4: memref<2091x32xf32, #tpu.memory_space<vmem>>, %arg5: memref<2x8xf32, #tpu.memory_space<vmem>>) attributes {dimension_semantics = [], scalar_prefetch = 0 : i64, scratch_operands = 0 : i64, tpu.core_type = #tpu.core_type<tc>} {
    %c0 = arith.constant 0 : index
    %c0_0 = arith.constant 0 : index
    %0 = vector.load %arg0[%c0, %c0_0] : memref<32x64xf32, #tpu.memory_space<vmem>>, vector<32x64xf32>
    %1 = tpu.iota {dimensions = array<i32: 0>} : vector<32x1xi32>
    %c16_i32 = arith.constant 16 : i32
    %c0_i32 = arith.constant 0 : i32
    %2 = arith.cmpi eq, %c16_i32, %c0_i32 : i32
    %c1_i32 = arith.constant 1 : i32
    %3 = arith.select %2, %c1_i32, %c16_i32 : i32
    %4 = vector.broadcast %3 : i32 to vector<32x1xi32>
    %5 = arith.remsi %1, %4 : vector<32x1xi32>
    %c0_i32_1 = arith.constant 0 : i32
    %6 = vector.broadcast %c0_i32_1 : i32 to vector<32x1xi32>
    %7 = arith.cmpi ne, %5, %6 : vector<32x1xi32>
    %c0_i32_2 = arith.constant 0 : i32
    %8 = vector.broadcast %c0_i32_2 : i32 to vector<32x1xi32>
    %9 = arith.cmpi slt, %5, %8 : vector<32x1xi32>
    %c0_i32_3 = arith.constant 0 : i32
    %10 = arith.cmpi slt, %3, %c0_i32_3 : i32
    %11 = vector.broadcast %10 : i1 to vector<32x1xi1>
    %12 = vector.broadcast %11 : vector<32x1xi1> to vector<32x1xi1>
    %13 = arith.xori %9, %12 : vector<32x1xi1>
    %14 = arith.andi %13, %7 : vector<32x1xi1>
    %15 = vector.broadcast %3 : i32 to vector<32x1xi32>
    %16 = arith.addi %5, %15 : vector<32x1xi32>
    %17 = arith.select %14, %16, %5 : vector<32x1xi1>, vector<32x1xi32>
    %c0_i32_4 = arith.constant 0 : i32
    %18 = vector.broadcast %c0_i32_4 : i32 to vector<32x1xi32>
    %19 = arith.cmpi sgt, %17, %18 : vector<32x1xi32>
    %c1_i32_5 = arith.constant 1 : i32
    %20 = tpu.dynamic_rotate %0 by %c1_i32_5 dim 0 : vector<32x64xf32>, i32 -> vector<32x64xf32>
    %cst = arith.constant 0.000000e+00 : f32
    %21 = vector.shape_cast %19 : vector<32x1xi1> to vector<32x1xi1>
    %22 = vector.broadcast %21 : vector<32x1xi1> to vector<32x64xi1>
    %23 = vector.broadcast %cst : f32 to vector<32x64xf32>
    %24 = arith.select %22, %20, %23 : vector<32x64xi1>, vector<32x64xf32>
    %c15_i32 = arith.constant 15 : i32
    %25 = vector.broadcast %c15_i32 : i32 to vector<32x1xi32>
    %26 = arith.cmpi slt, %17, %25 : vector<32x1xi32>
    %c31_i32 = arith.constant 31 : i32
    %27 = tpu.dynamic_rotate %0 by %c31_i32 dim 0 : vector<32x64xf32>, i32 -> vector<32x64xf32>
    %cst_6 = arith.constant 0.000000e+00 : f32
    %28 = vector.shape_cast %26 : vector<32x1xi1> to vector<32x1xi1>
    %29 = vector.broadcast %28 : vector<32x1xi1> to vector<32x64xi1>
    %30 = vector.broadcast %cst_6 : f32 to vector<32x64xf32>
    %31 = arith.select %29, %27, %30 : vector<32x64xi1>, vector<32x64xf32>
    %c0_7 = arith.constant 0 : index
    %c0_8 = arith.constant 0 : index
    %32 = vector.load %arg2[%c0_7, %c0_8] : memref<193x256xf32, #tpu.memory_space<vmem>>, vector<64x256xf32>
    %cst_9 = arith.constant dense<0.000000e+00> : vector<32x256xf32>
    %33 = tpu.matmul %24, %32, %cst_9 {dimension_numbers = #tpu.dot_dimension_numbers<[1], [0], [0], [1], [0, 0, 1, 1], [], []>} : vector<32x64xf32>, vector<64x256xf32>, vector<32x256xf32> -> vector<32x256xf32>
    %c64 = arith.constant 64 : index
    %c0_10 = arith.constant 0 : index
    %34 = vector.load %arg2[%c64, %c0_10] : memref<193x256xf32, #tpu.memory_space<vmem>>, vector<64x256xf32>
    %cst_11 = arith.constant dense<0.000000e+00> : vector<32x256xf32>
    %35 = tpu.matmul %0, %34, %cst_11 {dimension_numbers = #tpu.dot_dimension_numbers<[1], [0], [0], [1], [0, 0, 1, 1], [], []>} : vector<32x64xf32>, vector<64x256xf32>, vector<32x256xf32> -> vector<32x256xf32>
    %36 = arith.addf %33, %35 : vector<32x256xf32>
    %c128 = arith.constant 128 : index
    %c0_12 = arith.constant 0 : index
    %37 = vector.load %arg2[%c128, %c0_12] : memref<193x256xf32, #tpu.memory_space<vmem>>, vector<64x256xf32>
    %cst_13 = arith.constant dense<0.000000e+00> : vector<32x256xf32>
    %38 = tpu.matmul %31, %37, %cst_13 {dimension_numbers = #tpu.dot_dimension_numbers<[1], [0], [0], [1], [0, 0, 1, 1], [], []>} : vector<32x64xf32>, vector<64x256xf32>, vector<32x256xf32> -> vector<32x256xf32>
    %39 = arith.addf %36, %38 : vector<32x256xf32>
    %c192 = arith.constant 192 : index
    %c0_14 = arith.constant 0 : index
    %40 = vector.load %arg2[%c192, %c0_14] : memref<193x256xf32, #tpu.memory_space<vmem>>, vector<1x256xf32>
    %41 = vector.broadcast %40 : vector<1x256xf32> to vector<32x256xf32>
    %42 = arith.addf %39, %41 : vector<32x256xf32>
    %cst_15 = arith.constant 0.000000e+00 : f32
    %43 = vector.broadcast %cst_15 : f32 to vector<32x256xf32>
    %44 = arith.maximumf %42, %43 : vector<32x256xf32>
    %45 = vector.extract_strided_slice %44 {offsets = [0, 0], sizes = [32, 128], strides = [1, 1]} : vector<32x256xf32> to vector<32x128xf32>
    %46 = vector.extract_strided_slice %44 {offsets = [0, 128], sizes = [32, 128], strides = [1, 1]} : vector<32x256xf32> to vector<32x128xf32>
    %47 = arith.maximumf %45, %46 : vector<32x128xf32>
    %c31_i32_16 = arith.constant 31 : i32
    %48 = tpu.dynamic_rotate %47 by %c31_i32_16 dim 0 : vector<32x128xf32>, i32 -> vector<32x128xf32>
    %49 = arith.maximumf %47, %48 : vector<32x128xf32>
    %c0_17 = arith.constant 0 : index
    %c0_18 = arith.constant 0 : index
    %50 = vector.load %arg1[%c0_17, %c0_18] : memref<1x8xf32, #tpu.memory_space<vmem>>, vector<1x8xf32>
    %c1024 = arith.constant 1024 : index
    %c0_19 = arith.constant 0 : index
    %51 = vector.load %arg4[%c1024, %c0_19] : memref<2091x32xf32, #tpu.memory_space<vmem>>, vector<8x32xf32>
    %cst_20 = arith.constant dense<0.000000e+00> : vector<1x32xf32>
    %52 = tpu.matmul %50, %51, %cst_20 {dimension_numbers = #tpu.dot_dimension_numbers<[1], [0], [0], [1], [0, 0, 1, 1], [], []>} : vector<1x8xf32>, vector<8x32xf32>, vector<1x32xf32> -> vector<1x32xf32>
    %c2088 = arith.constant 2088 : index
    %c0_21 = arith.constant 0 : index
    %53 = vector.load %arg4[%c2088, %c0_21] : memref<2091x32xf32, #tpu.memory_space<vmem>>, vector<1x32xf32>
    %54 = arith.addf %52, %53 : vector<1x32xf32>
    %cst_22 = arith.constant 0.000000e+00 : f32
    %55 = vector.broadcast %cst_22 : f32 to vector<2x32xf32>
    %56 = vector.extract_strided_slice %49 {offsets = [0, 0], sizes = [1, 128], strides = [1, 1]} : vector<32x128xf32> to vector<1x128xf32>
    %57 = vector.extract_strided_slice %49 {offsets = [16, 0], sizes = [1, 128], strides = [1, 1]} : vector<32x128xf32> to vector<1x128xf32>
    %58 = tpu.concatenate %56, %57 in 0 : vector<1x128xf32>, vector<1x128xf32> -> vector<2x128xf32>
    %c0_23 = arith.constant 0 : index
    %c0_24 = arith.constant 0 : index
    %59 = vector.load %arg4[%c0_23, %c0_24] : memref<2091x32xf32, #tpu.memory_space<vmem>>, vector<128x32xf32>
    %cst_25 = arith.constant dense<0.000000e+00> : vector<2x32xf32>
    %60 = tpu.matmul %58, %59, %cst_25 {dimension_numbers = #tpu.dot_dimension_numbers<[1], [0], [0], [1], [0, 0, 1, 1], [], []>} : vector<2x128xf32>, vector<128x32xf32>, vector<2x32xf32> -> vector<2x32xf32>
    %61 = arith.addf %55, %60 : vector<2x32xf32>
    %62 = vector.extract_strided_slice %49 {offsets = [2, 0], sizes = [1, 128], strides = [1, 1]} : vector<32x128xf32> to vector<1x128xf32>
    %63 = vector.extract_strided_slice %49 {offsets = [18, 0], sizes = [1, 128], strides = [1, 1]} : vector<32x128xf32> to vector<1x128xf32>
    %64 = tpu.concatenate %62, %63 in 0 : vector<1x128xf32>, vector<1x128xf32> -> vector<2x128xf32>
    %c128_26 = arith.constant 128 : index
    %c0_27 = arith.constant 0 : index
    %65 = vector.load %arg4[%c128_26, %c0_27] : memref<2091x32xf32, #tpu.memory_space<vmem>>, vector<128x32xf32>
    %cst_28 = arith.constant dense<0.000000e+00> : vector<2x32xf32>
    %66 = tpu.matmul %64, %65, %cst_28 {dimension_numbers = #tpu.dot_dimension_numbers<[1], [0], [0], [1], [0, 0, 1, 1], [], []>} : vector<2x128xf32>, vector<128x32xf32>, vector<2x32xf32> -> vector<2x32xf32>
    %67 = arith.addf %61, %66 : vector<2x32xf32>
    %68 = vector.extract_strided_slice %49 {offsets = [4, 0], sizes = [1, 128], strides = [1, 1]} : vector<32x128xf32> to vector<1x128xf32>
    %69 = vector.extract_strided_slice %49 {offsets = [20, 0], sizes = [1, 128], strides = [1, 1]} : vector<32x128xf32> to vector<1x128xf32>
    %70 = tpu.concatenate %68, %69 in 0 : vector<1x128xf32>, vector<1x128xf32> -> vector<2x128xf32>
    %c256 = arith.constant 256 : index
    %c0_29 = arith.constant 0 : index
    %71 = vector.load %arg4[%c256, %c0_29] : memref<2091x32xf32, #tpu.memory_space<vmem>>, vector<128x32xf32>
    %cst_30 = arith.constant dense<0.000000e+00> : vector<2x32xf32>
    %72 = tpu.matmul %70, %71, %cst_30 {dimension_numbers = #tpu.dot_dimension_numbers<[1], [0], [0], [1], [0, 0, 1, 1], [], []>} : vector<2x128xf32>, vector<128x32xf32>, vector<2x32xf32> -> vector<2x32xf32>
    %73 = arith.addf %67, %72 : vector<2x32xf32>
    %74 = vector.extract_strided_slice %49 {offsets = [6, 0], sizes = [1, 128], strides = [1, 1]} : vector<32x128xf32> to vector<1x128xf32>
    %75 = vector.extract_strided_slice %49 {offsets = [22, 0], sizes = [1, 128], strides = [1, 1]} : vector<32x128xf32> to vector<1x128xf32>
    %76 = tpu.concatenate %74, %75 in 0 : vector<1x128xf32>, vector<1x128xf32> -> vector<2x128xf32>
    %c384 = arith.constant 384 : index
    %c0_31 = arith.constant 0 : index
    %77 = vector.load %arg4[%c384, %c0_31] : memref<2091x32xf32, #tpu.memory_space<vmem>>, vector<128x32xf32>
    %cst_32 = arith.constant dense<0.000000e+00> : vector<2x32xf32>
    %78 = tpu.matmul %76, %77, %cst_32 {dimension_numbers = #tpu.dot_dimension_numbers<[1], [0], [0], [1], [0, 0, 1, 1], [], []>} : vector<2x128xf32>, vector<128x32xf32>, vector<2x32xf32> -> vector<2x32xf32>
    %79 = arith.addf %73, %78 : vector<2x32xf32>
    %80 = vector.extract_strided_slice %49 {offsets = [8, 0], sizes = [1, 128], strides = [1, 1]} : vector<32x128xf32> to vector<1x128xf32>
    %81 = vector.extract_strided_slice %49 {offsets = [24, 0], sizes = [1, 128], strides = [1, 1]} : vector<32x128xf32> to vector<1x128xf32>
    %82 = tpu.concatenate %80, %81 in 0 : vector<1x128xf32>, vector<1x128xf32> -> vector<2x128xf32>
    %c512 = arith.constant 512 : index
    %c0_33 = arith.constant 0 : index
    %83 = vector.load %arg4[%c512, %c0_33] : memref<2091x32xf32, #tpu.memory_space<vmem>>, vector<128x32xf32>
    %cst_34 = arith.constant dense<0.000000e+00> : vector<2x32xf32>
    %84 = tpu.matmul %82, %83, %cst_34 {dimension_numbers = #tpu.dot_dimension_numbers<[1], [0], [0], [1], [0, 0, 1, 1], [], []>} : vector<2x128xf32>, vector<128x32xf32>, vector<2x32xf32> -> vector<2x32xf32>
    %85 = arith.addf %79, %84 : vector<2x32xf32>
    %86 = vector.extract_strided_slice %49 {offsets = [10, 0], sizes = [1, 128], strides = [1, 1]} : vector<32x128xf32> to vector<1x128xf32>
    %87 = vector.extract_strided_slice %49 {offsets = [26, 0], sizes = [1, 128], strides = [1, 1]} : vector<32x128xf32> to vector<1x128xf32>
    %88 = tpu.concatenate %86, %87 in 0 : vector<1x128xf32>, vector<1x128xf32> -> vector<2x128xf32>
    %c640 = arith.constant 640 : index
    %c0_35 = arith.constant 0 : index
    %89 = vector.load %arg4[%c640, %c0_35] : memref<2091x32xf32, #tpu.memory_space<vmem>>, vector<128x32xf32>
    %cst_36 = arith.constant dense<0.000000e+00> : vector<2x32xf32>
    %90 = tpu.matmul %88, %89, %cst_36 {dimension_numbers = #tpu.dot_dimension_numbers<[1], [0], [0], [1], [0, 0, 1, 1], [], []>} : vector<2x128xf32>, vector<128x32xf32>, vector<2x32xf32> -> vector<2x32xf32>
    %91 = arith.addf %85, %90 : vector<2x32xf32>
    %92 = vector.extract_strided_slice %49 {offsets = [12, 0], sizes = [1, 128], strides = [1, 1]} : vector<32x128xf32> to vector<1x128xf32>
    %93 = vector.extract_strided_slice %49 {offsets = [28, 0], sizes = [1, 128], strides = [1, 1]} : vector<32x128xf32> to vector<1x128xf32>
    %94 = tpu.concatenate %92, %93 in 0 : vector<1x128xf32>, vector<1x128xf32> -> vector<2x128xf32>
    %c768 = arith.constant 768 : index
    %c0_37 = arith.constant 0 : index
    %95 = vector.load %arg4[%c768, %c0_37] : memref<2091x32xf32, #tpu.memory_space<vmem>>, vector<128x32xf32>
    %cst_38 = arith.constant dense<0.000000e+00> : vector<2x32xf32>
    %96 = tpu.matmul %94, %95, %cst_38 {dimension_numbers = #tpu.dot_dimension_numbers<[1], [0], [0], [1], [0, 0, 1, 1], [], []>} : vector<2x128xf32>, vector<128x32xf32>, vector<2x32xf32> -> vector<2x32xf32>
    %97 = arith.addf %91, %96 : vector<2x32xf32>
    %98 = vector.extract_strided_slice %49 {offsets = [14, 0], sizes = [1, 128], strides = [1, 1]} : vector<32x128xf32> to vector<1x128xf32>
    %99 = vector.extract_strided_slice %49 {offsets = [30, 0], sizes = [1, 128], strides = [1, 1]} : vector<32x128xf32> to vector<1x128xf32>
    %100 = tpu.concatenate %98, %99 in 0 : vector<1x128xf32>, vector<1x128xf32> -> vector<2x128xf32>
    %c896 = arith.constant 896 : index
    %c0_39 = arith.constant 0 : index
    %101 = vector.load %arg4[%c896, %c0_39] : memref<2091x32xf32, #tpu.memory_space<vmem>>, vector<128x32xf32>
    %cst_40 = arith.constant dense<0.000000e+00> : vector<2x32xf32>
    %102 = tpu.matmul %100, %101, %cst_40 {dimension_numbers = #tpu.dot_dimension_numbers<[1], [0], [0], [1], [0, 0, 1, 1], [], []>} : vector<2x128xf32>, vector<128x32xf32>, vector<2x32xf32> -> vector<2x32xf32>
    %103 = arith.addf %97, %102 : vector<2x32xf32>
    %104 = vector.broadcast %54 : vector<1x32xf32> to vector<2x32xf32>
    %105 = arith.addf %103, %104 : vector<2x32xf32>
    %cst_41 = arith.constant 0.000000e+00 : f32
    %106 = vector.broadcast %cst_41 : f32 to vector<2x32xf32>
    %107 = arith.maximumf %105, %106 : vector<2x32xf32>
    %c1032 = arith.constant 1032 : index
    %c0_42 = arith.constant 0 : index
    %108 = vector.load %arg4[%c1032, %c0_42] : memref<2091x32xf32, #tpu.memory_space<vmem>>, vector<32x32xf32>
    %cst_43 = arith.constant dense<0.000000e+00> : vector<2x32xf32>
    %109 = tpu.matmul %107, %108, %cst_43 {dimension_numbers = #tpu.dot_dimension_numbers<[1], [0], [0], [1], [0, 0, 1, 1], [], []>} : vector<2x32xf32>, vector<32x32xf32>, vector<2x32xf32> -> vector<2x32xf32>
    %c2089 = arith.constant 2089 : index
    %c0_44 = arith.constant 0 : index
    %110 = vector.load %arg4[%c2089, %c0_44] : memref<2091x32xf32, #tpu.memory_space<vmem>>, vector<1x32xf32>
    %111 = vector.broadcast %110 : vector<1x32xf32> to vector<2x32xf32>
    %112 = arith.addf %109, %111 : vector<2x32xf32>
    %cst_45 = arith.constant 0.000000e+00 : f32
    %113 = vector.broadcast %cst_45 : f32 to vector<2x32xf32>
    %114 = arith.maximumf %112, %113 : vector<2x32xf32>
    %c0_46 = arith.constant 0 : index
    %c0_47 = arith.constant 0 : index
    %115 = vector.load %arg3[%c0_46, %c0_47] : memref<33x1024xf32, #tpu.memory_space<vmem>>, vector<32x1024xf32>
    %cst_48 = arith.constant dense<0.000000e+00> : vector<2x1024xf32>
    %116 = tpu.matmul %114, %115, %cst_48 {dimension_numbers = #tpu.dot_dimension_numbers<[1], [0], [0], [1], [0, 0, 1, 1], [], []>} : vector<2x32xf32>, vector<32x1024xf32>, vector<2x1024xf32> -> vector<2x1024xf32>
    %c32 = arith.constant 32 : index
    %c0_49 = arith.constant 0 : index
    %117 = vector.load %arg3[%c32, %c0_49] : memref<33x1024xf32, #tpu.memory_space<vmem>>, vector<1x1024xf32>
    %118 = vector.broadcast %117 : vector<1x1024xf32> to vector<2x1024xf32>
    %119 = arith.addf %116, %118 : vector<2x1024xf32>
    %cst_50 = arith.constant 0.000000e+00 : f32
    %120 = vector.broadcast %cst_50 : f32 to vector<2x1024xf32>
    %121 = arith.maximumf %119, %120 : vector<2x1024xf32>
    %c1064 = arith.constant 1064 : index
    %c0_51 = arith.constant 0 : index
    %122 = vector.load %arg4[%c1064, %c0_51] : memref<2091x32xf32, #tpu.memory_space<vmem>>, vector<1024x32xf32>
    %cst_52 = arith.constant dense<0.000000e+00> : vector<2x32xf32>
    %123 = tpu.matmul %121, %122, %cst_52 {dimension_numbers = #tpu.dot_dimension_numbers<[1], [0], [0], [1], [0, 0, 1, 1], [], []>} : vector<2x1024xf32>, vector<1024x32xf32>, vector<2x32xf32> -> vector<2x32xf32>
    %c2090 = arith.constant 2090 : index
    %c0_53 = arith.constant 0 : index
    %124 = vector.load %arg4[%c2090, %c0_53] : memref<2091x32xf32, #tpu.memory_space<vmem>>, vector<1x32xf32>
    %125 = vector.broadcast %124 : vector<1x32xf32> to vector<2x32xf32>
    %126 = arith.addf %123, %125 : vector<2x32xf32>
    %cst_54 = arith.constant 0.000000e+00 : f32
    %127 = vector.broadcast %cst_54 : f32 to vector<2x32xf32>
    %128 = arith.maximumf %126, %127 : vector<2x32xf32>
    %129 = vector.extract_strided_slice %128 {offsets = [0, 0], sizes = [2, 8], strides = [1, 1]} : vector<2x32xf32> to vector<2x8xf32>
    %c0_55 = arith.constant 0 : index
    %c0_56 = arith.constant 0 : index
    %130 = vector.load %arg5[%c0_55, %c0_56] : memref<2x8xf32, #tpu.memory_space<vmem>>, vector<2x8xf32>
    tpu.vector_store %arg5[%c0_55, %c0_56], %129 {strides = array<i32>} : memref<2x8xf32, #tpu.memory_space<vmem>>, vector<2x8xf32>,
    return
  }
}

</mosaic_0001>

<bundles_post_ra>
// kernel: internal_model_forward.1
= control target key start
LH: loop header
LB: loop body
LE: loop exit
PB: predicated region body
PF: predicated region fallthrough
CT: control target
= control target key end

     0   :  { %v25_v3 = vlaneseq  ;;  %vm160_vm2 = vcmask 523264   ;;  %v2864_v46 = vmov 0.0   ;;  %s4274_s0 = inlined_call_operand.vmem [shape: f32[32,64], index: 0, kind: input, shape index: {}]   ;;  %s4275_s1 = inlined_call_operand.vmem [shape: f32[1,8], index: 1, kind: input, shape index: {}]   ;;  %s4276_s2 = inlined_call_operand.vmem [shape: f32[193,256], index: 2, kind: input, shape index: {}]   ;;  %s4277_s3 = inlined_call_operand.vmem [shape: f32[33,1024], index: 3, kind: input, shape index: {}]   ;;  %s4278_s4 = inlined_call_operand.vmem [shape: f32[2091,32], index: 4, kind: input, shape index: {}]   ;;  %s4279_s5 = inlined_call_operand.hbm [shape: f32[2,8], index: 5, kind: output, shape index: {}]  }
   0x1   :  { %v159_v0 = vld [vmem:[%s4276_s2 + $0xf8] sm:$0xff]  ;;  %v158_v2 = vld [vmem:[%s4276_s2 + $0xf0] sm:$0xff]  ;;  %v157_v5 = vld [vmem:[%s4276_s2 + $0xe8] sm:$0xff]  ;;  %237 = vmatprep.mubr.f32.mxu0 %v2864_v46  ;;  %338 = vmatprep.mubr.f32.mxu1 %v2864_v46 }
   0x2   :  { %v143_v1 = vld [vmem:[%s4276_s2 + $0x78] sm:$0xff]  ;;  %189 = vmatprep.subr.mxu0 %v159_v0  ;;  %v142_v4 = vld [vmem:[%s4276_s2 + $0x70] sm:$0xff]  ;;  %v141_v6 = vld [vmem:[%s4276_s2 + $0x68] sm:$0xff]  ;;  %v2939_v15 = vshrl.u32 %v25_v3, 7 }
   0x3   :  { %290 = vmatprep.subr.mxu1 %v143_v1  ;;  %190 = vmatpush1.msra.mxu0 %v158_v2  ;;  %v156_v7 = vld [vmem:[%s4276_s2 + $0xe0] sm:$0xff]  ;;  %v155_v9 = vld [vmem:[%s4276_s2 + $0xd8] sm:$0xff]  ;;  %v154_v11 = vld [vmem:[%s4276_s2 + $0xd0] sm:$0xff] }
   0x4   :  { %291 = vmatpush1.msra.mxu1 %v142_v4  ;;  %v140_v8 = vld [vmem:[%s4276_s2 + $0x60] sm:$0xff]  ;;  %191 = vmatprep.subr.mxu0 %v157_v5  ;;  %v139_v10 = vld [vmem:[%s4276_s2 + $0x58] sm:$0xff]  ;;  %v138_v12 = vld [vmem:[%s4276_s2 + $0x50] sm:$0xff]  ;;  %v34_v24 = vand.u32 15, %v2939_v15  ;;  %vm86_vm0 = vcmp.lt.s32.totalorder %v2939_v15, 1  ;;  %v28_v39 = vadd.s32 16, %v2939_v15 }
   0x5   :  { %292 = vmatprep.subr.mxu1 %v141_v6  ;;  %192 = vmatpush1.msra.mxu0 %v156_v7  ;;  %v153_v13 = vld [vmem:[%s4276_s2 + $0xc8] sm:$0xff]  ;;  %v152_v16 = vld [vmem:[%s4276_s2 + $0xc0] sm:$0xff]  ;;  %v151_v18 = vld [vmem:[%s4276_s2 + $0xb8] sm:$0xff] }
   0x6   :  { %293 = vmatpush1.msra.mxu1 %v140_v8  ;;  %v137_v14 = vld [vmem:[%s4276_s2 + $0x48] sm:$0xff]  ;;  %193 = vmatprep.subr.mxu0 %v155_v9  ;;  %v136_v17 = vld [vmem:[%s4276_s2 + $0x40] sm:$0xff]  ;;  %v135_v19 = vld [vmem:[%s4276_s2 + $0x38] sm:$0xff]  ;;  %vm3002_vm1 = vcmp.gt.s32.totalorder %v34_v24, 0  ;;  %v48_v49 = vand.u32 15, %v28_v39 }
   0x7   :  { %294 = vmatprep.subr.mxu1 %v139_v10  ;;  %194 = vmatpush1.msra.mxu0 %v154_v11  ;;  %v150_v20 = vld [vmem:[%s4276_s2 + $0xb0] sm:$0xff]  ;;  %v149_v22 = vld [vmem:[%s4276_s2 + $0xa8] sm:$0xff]  ;;  %v148_v25 = vld [vmem:[%s4276_s2 + $0xa0] sm:$0xff] }
   0x8   :  { %295 = vmatpush1.msra.mxu1 %v138_v12  ;;  %195 = vmatprep.subr.mxu0 %v153_v13  ;;  %v134_v21 = vld [vmem:[%s4276_s2 + $0x30] sm:$0xff]  ;;  %v133_v23 = vld [vmem:[%s4276_s2 + $0x28] sm:$0xff]  ;;  %v132_v26 = vld [vmem:[%s4276_s2 + $0x20] sm:$0xff] }
   0x9   :  { %296 = vmatprep.subr.mxu1 %v137_v14  ;;  %196 = vmatpush1.msra.mxu0 %v152_v16  ;;  %v147_v27 = vld [vmem:[%s4276_s2 + $0x98] sm:$0xff]  ;;  %v2981_v29 = vld [vmem:[%s4274_s0] sm:$0xff]  ;;  %v146_v30 = vld [vmem:[%s4276_s2 + $0x90] sm:$0xff] }
   0xa   :  { %297 = vmatpush1.msra.mxu1 %v136_v17  ;;  %197 = vmatprep.subr.mxu0 %v151_v18  ;;  %v131_v28 = vld [vmem:[%s4276_s2 + $0x18] sm:$0xff]  ;;  %v130_v31 = vld [vmem:[%s4276_s2 + $0x10] sm:$0xff]  ;;  %v82_v32 = vrot.slane %v2981_v29, 7  ;;  %v145_v34 = vld [vmem:[%s4276_s2 + $0x88] sm:$0xff] }
   0xb   :  { %298 = vmatprep.subr.mxu1 %v135_v19  ;;  %198 = vmatpush1.msra.mxu0 %v150_v20  ;;  %v2993_v33 = vld [vmem:[%s4274_s0 + $0x18] sm:$0xff]  ;;  %v129_v35 = vld [vmem:[%s4276_s2 + $0x8] sm:$0xff]  ;;  %v144_v40 = vld [vmem:[%s4276_s2 + $0x80] sm:$0xff] }
   0xc   :  { %299 = vmatpush1.msra.mxu1 %v134_v21  ;;  %199 = vmatprep.subr.mxu0 %v149_v22  ;;  %v85_v37 = vrot.slane %v2993_v33, 7  ;;  %v3010_v38 = vld [vmem:[%s4274_s0 + $0x8] sm:$0xff]  ;;  %v128_v41 = vld [vmem:[%s4276_s2] sm:$0xff]  ;;  %v3024_v43 = vld [vmem:[%s4274_s0 + $0x10] sm:$0xff] }
   0xd   :  { %300 = vmatprep.subr.mxu1 %v133_v23  ;;  %200 = vmatpush1.msra.mxu0 %v148_v25  ;;  %v83_v45 = vrot.slane %v3010_v38, 7  ;;  %v378_v47 = vld [vmem:[%s4276_s2 + $0x178] sm:$0xff]  ;;  %v84_v48 = vrot.slane %v3024_v43, 7  ;;  %v377_v50 = vld [vmem:[%s4276_s2 + $0x170] sm:$0xff] }
   0xe   :  { %301 = vmatpush1.msra.mxu1 %v132_v26  ;;  %201 = vmatprep.subr.mxu0 %v147_v27  ;;  %v90_v42 = vsel %vm86_vm0, %v85_v37, %v82_v32 }
   0xf   :  { %302 = vmatprep.subr.mxu1 %v131_v28  ;;  %202 = vmatpush1.msra.mxu0 %v146_v30  ;;  %v99_v44 = vsel %vm3002_vm1, %v90_v42, 0.0 }
  0x10   :  { %303 = vmatpush1.msra.mxu1 %v130_v31  ;;  %203 = vmatprep.subr.mxu0 %v145_v34 }
  0x11   :  { %304 = vmatprep.subr.mxu1 %v129_v35  ;;  %204 = vmatpush1.msra.mxu0 %v144_v40 }
  0x12   :  { %305 = vmatpush1.msra.mxu1 %v128_v41 }
  0x13   :  { %10 = vsyncpa [#allocation3], 0  ;;  %2237 = vmatmul.mubr.msk.f32.vlgmr.msra.gmra.mxu0 %vm160_vm2, %v2981_v29  ;;  %2241 = vmatmul.mubr.msk.f32.vlgmr.msra.gmra.mxu1 %vm160_vm2, %v99_v44  ;;  %v376_v51 = vld [vmem:[%s4276_s2 + $0x168] sm:$0xff]  ;;  %v375_v52 = vld [vmem:[%s4276_s2 + $0x160] sm:$0xff]  ;;  %v89_v53 = vsel %vm86_vm0, %v82_v32, %v83_v45  ;;  %vm3054_vm3 = vcmp.gt.s32.totalorder %v48_v49, 0  ;;  %v88_v56 = vsel %vm86_vm0, %v83_v45, %v84_v48  ;;  %v27_v63 = vadd.s32 8, %v2939_v15 }
  0x14   :  { %407 = vmatprep.subr.mxu0 %v378_v47  ;;  %243 = vmatprep.mubr.f32.mxu0 %v2864_v46  ;;  %v374_v54 = vld [vmem:[%s4276_s2 + $0x158] sm:$0xff]  ;;  %v373_v57 = vld [vmem:[%s4276_s2 + $0x150] sm:$0xff]  ;;  %v372_v58 = vld [vmem:[%s4276_s2 + $0x148] sm:$0xff]  ;;  %v101_v60 = vsel %vm3054_vm3, %v88_v56, 0.0  ;;  %v87_v2 = vsel %vm86_vm0, %v84_v48, %v85_v37  ;;  %v107_v3 = vrot.slane %v2981_v29, 1  ;;  %v108_v4 = vrot.slane %v3010_v38, 1 }
  0x15   :  { %408 = vmatpush1.msra.mxu0 %v377_v50  ;;  %344 = vmatprep.mubr.f32.mxu1 %v2864_v46  ;;  %v371_v59 = vld [vmem:[%s4276_s2 + $0x140] sm:$0xff]  ;;  %v370_v61 = vld [vmem:[%s4276_s2 + $0x138] sm:$0xff]  ;;  %v369_v62 = vld [vmem:[%s4276_s2 + $0x130] sm:$0xff]  ;;  %v109_v6 = vrot.slane %v3024_v43, 1  ;;  %vm111_vm4 = vcmp.lt.s32.totalorder %v2939_v15, 7  ;;  %v41_v8 = vand.u32 15, %v27_v63 }
  0x16   :  { %409 = vmatprep.subr.mxu0 %v376_v51  ;;  %2543 = vmatprep.subr.mxu1 %v2864_v46  ;;  %v368_v0 = vld [vmem:[%s4276_s2 + $0x128] sm:$0xff]  ;;  %v367_v1 = vld [vmem:[%s4276_s2 + $0x120] sm:$0xff]  ;;  %v366_v5 = vld [vmem:[%s4276_s2 + $0x118] sm:$0xff]  ;;  %v114_v11 = vsel %vm111_vm4, %v107_v3, %v108_v4  ;;  %v29_v13 = vadd.s32 24, %v2939_v15  ;;  %v110_v16 = vrot.slane %v2993_v33, 1  ;;  %vm2865_vm7 = vmmov 0  }
  0x17   :  { %410 = vmatpush1.msra.mxu0 %v375_v52  ;;  %2242 = vmatmul.mubr.msk.f32.gmra.mxu1 %vm160_vm2, %v89_v53  ;;  %v365_v7 = vld [vmem:[%s4276_s2 + $0x110] sm:$0xff]  ;;  %v364_v9 = vld [vmem:[%s4276_s2 + $0x108] sm:$0xff]  ;;  %v363_v10 = vld [vmem:[%s4276_s2 + $0x100] sm:$0xff]  ;;  %vm104_vm5 = vcmp.lt.s32.totalorder %v41_v8, 15  ;;  %v113_v12 = vsel %vm111_vm4, %v108_v4, %v109_v6  ;;  %vm536_vm8 = vcmask 64512   ;;  %vm613_vm9 = vcmask 1040384  }
  0x18   :  { %2238 = vmatmul.mubr.msk.f32.gmra.mxu0 %vm160_vm2, %v3010_v38  ;;  %411 = vmatprep.subr.mxu0 %v374_v54  ;;  %v125_v14 = vsel %vm104_vm5, %v113_v12, 0.0  ;;  %v55_v17 = vand.u32 15, %v29_v13  ;;  %v112_v18 = vsel %vm111_vm4, %v109_v6, %v110_v16  ;;  %v115_v19 = vsel %vm111_vm4, %v110_v16, %v107_v3  ;;  %v534_v21 = vld [vmem:[%s4278_s4 + $0x400] sm:$0xff]  ;;  %v652_v23 = vld [vmem:[%s4278_s4 + $0xf8] sm:$0xff]  ;;  %v651_v25 = vld [vmem:[%s4278_s4 + $0xf0] sm:$0xff]  ;;  %s2866_s29 = smov [#allocation2]  }
  0x19   :  { %412 = vmatpush1.msra.mxu0 %v373_v57  ;;  %249 = vmatprep.mubr.f32.mxu0 %v2864_v46  ;;  %v533_v22 = vld [vmem:[%s4275_s1] sm:$0x1]  ;;  %v630_v24 = vld [vmem:[%s4278_s4 + $0x78] sm:$0xff]  ;;  %v629_v26 = vld [vmem:[%s4278_s4 + $0x70] sm:$0xff]  ;;  %vm1360_vm10 = vcmask 261120   ;;  %s2229_s1 = sshll.u32 %s2866_s29, 4  ;;  %s2230_s1 = int_to_ptr.vmem [resolvable:$true] %s2229_s1 }
  0x1a   :  { %413 = vmatprep.subr.mxu0 %v372_v58  ;;  %350 = vmatprep.mubr.f32.mxu1 %v2864_v46  ;;  %vm106_vm6 = vcmp.lt.s32.totalorder %v55_v17, 15  ;;  %v650_v27 = vld [vmem:[%s4278_s4 + $0xe8] sm:$0xff]  ;;  %v649_v29 = vld [vmem:[%s4278_s4 + $0xe0] sm:$0xff]  ;;  %v648_v31 = vld [vmem:[%s4278_s4 + $0xd8] sm:$0xff]  ;;  %vm2221_vm11 = vcmask 58368   ;;  %s2842_s30 = scalar_lea.vmem %s2230_s1, 32  ;;  %p2847_p1 = scmp.lt.s32.totalorder %s2230_s1, %s2230_s1 }
  0x1b   :  { %414 = vmatpush1.msra.mxu0 %v371_v59  ;;  %2243 = vmatmul.mubr.msk.f32.gmra.mxu1 %vm160_vm2, %v101_v60  ;;  %v127_v20 = vsel %vm106_vm6, %v115_v19, 0.0  ;;  %v628_v28 = vld [vmem:[%s4278_s4 + $0x68] sm:$0xff]  ;;  %v627_v30 = vld [vmem:[%s4278_s4 + $0x60] sm:$0xff]  ;;  %v626_v32 = vld [vmem:[%s4278_s4 + $0x58] sm:$0xff]  ;;  %p2843_p0 = scmp.ne.s32.totalorder %s2230_s1, %s2842_s30  ;;  %p2848_p2 = scmp.lt.s32.totalorder %s2842_s30, %s2842_s30 }
  0x1c   :  { %2239 = vmatmul.mubr.msk.f32.gmra.mxu0 %vm160_vm2, %v3024_v43  ;;  %415 = vmatprep.subr.mxu0 %v370_v61  ;;  %v625_v34 = vld [vmem:[%s4278_s4 + $0x50] sm:$0xff]  ;;  %v646_v35 = vld [vmem:[%s4278_s4 + $0xc8] sm:$0xff]  ;;  %v645_v37 = vld [vmem:[%s4278_s4 + $0xc0] sm:$0xff] }
  0x1d   :  { %416 = vmatpush1.msra.mxu0 %v369_v62  ;;  %255 = vmatprep.mubr.f32.mxu0 %v2864_v46  ;;  %v624_v36 = vld [vmem:[%s4278_s4 + $0x48] sm:$0xff]  ;;  %v623_v38 = vld [vmem:[%s4278_s4 + $0x40] sm:$0xff]  ;;  %v644_v39 = vld [vmem:[%s4278_s4 + $0xb8] sm:$0xff]  ;;  %p2849_p3 = por %p2848_p2, %p2847_p1 }
  0x1e   :  { %417 = vmatprep.subr.mxu0 %v368_v0  ;;  %356 = vmatprep.mubr.f32.mxu1 %v2864_v46  ;;  %v622_v40 = vld [vmem:[%s4278_s4 + $0x38] sm:$0xff]  ;;  %v643_v41 = vld [vmem:[%s4278_s4 + $0xb0] sm:$0xff]  ;;  %v642_v43 = vld [vmem:[%s4278_s4 + $0xa8] sm:$0xff] }
  0x1f   :  { %418 = vmatpush1.msra.mxu0 %v367_v1  ;;  %2244 = vmatmul.mubr.msk.f32.gmra.mxu1 %vm160_vm2, %v87_v2  ;;  %v621_v42 = vld [vmem:[%s4278_s4 + $0x30] sm:$0xff]  ;;  %v620_v44 = vld [vmem:[%s4278_s4 + $0x28] sm:$0xff]  ;;  %v641_v45 = vld [vmem:[%s4278_s4 + $0xa0] sm:$0xff]  ;;  %p2850_p4 = pnand %p2849_p3, %p2843_p0 }
  0x20   :  { %2240 = vmatmul.mubr.msk.f32.gmra.mxu0 %vm160_vm2, %v2993_v33  ;;  %419 = vmatprep.subr.mxu0 %v366_v5  ;;  %v647_v33 = vld [vmem:[%s4278_s4 + $0xd0] sm:$0xff]  ;;  %v619_v47 = vld [vmem:[%s4278_s4 + $0x20] sm:$0xff]  ;;  %v640_v48 = vld [vmem:[%s4278_s4 + $0x98] sm:$0xff]  ;;  %v497_v5 = vsub.s32 1, %v2939_v15 }
  0x21   :  { %420 = vmatpush1.msra.mxu0 %v365_v7  ;;  %455 = vmatprep.mubr.f32.mxu0 %v2864_v46  ;;  %v618_v49 = vld [vmem:[%s4278_s4 + $0x18] sm:$0xff]  ;;  %v639_v50 = vld [vmem:[%s4278_s4 + $0x90] sm:$0xff]  ;;  %v638_v52 = vld [vmem:[%s4278_s4 + $0x88] sm:$0xff]  ;;  %v3278_v7 = vsub.s32 0, %v2939_v15 }
  0x22   :  { %421 = vmatprep.subr.mxu0 %v364_v9  ;;  %2544 = vmatpush3.msra.mxu1 %v534_v21  ;;  %v617_v51 = vld [vmem:[%s4278_s4 + $0x10] sm:$0xff]  ;;  %v616_v53 = vld [vmem:[%s4278_s4 + $0x8] sm:$0xff]  ;;  %v637_v54 = vld [vmem:[%s4278_s4 + $0x80] sm:$0xff] }
  0x23   :  { %422 = vmatpush1.msra.mxu0 %v363_v10  ;;  %2583 = vmatprep.subr.mxu1 %v2864_v46  ;;  %v615_v55 = vld [vmem:[%s4278_s4] sm:$0xff] }
  0x24   :  { %2245 = vmatmul.mubr.msk.f32.vlgmr.msra.gmra.mxu0 %vm160_vm2, %v114_v11  ;;  %2548 = vmatprep.subr.mxu0 %v2864_v46  ;;  %v2249_v9 = vld [vmem:[%s4276_s2 + $0x180] ss:$8 sm:$0x3] }
  0x25   :  { %461 = vmatprep.mubr.f32.mxu0 %v2864_v46  ;;  %2545 = vmatprep.mubr.msk.f32.mxu1 %vm2865_vm7, %v2864_v46  ;;  %v498_v13 = vrot.slane %v2249_v9, %v497_v5 }
  0x26   :  { %2546 = vmatmul.mubr.msk.f32.vlgmr.msra.gmra.mxu1 %vm536_vm8, %v533_v22  ;;  %2549 = vmatpush3.msra.mxu0 %v652_v23 }
  0x27   :  { %2584 = vmatpush3.msra.mxu1 %v630_v24  ;;  %2550 = vmatprep.subr.mxu0 %v2864_v46 }
  0x28   :  { %2246 = vmatmul.mubr.msk.f32.gmra.mxu0 %vm160_vm2, %v125_v14  ;;  %2585 = vmatprep.subr.mxu1 %v2864_v46 }
  0x29   :  { %467 = vmatprep.mubr.f32.mxu0 %v2864_v46  ;;  %2551 = vmatpush3.msra.mxu0 %v651_v25 }
  0x2a   :  { %2586 = vmatpush3.msra.mxu1 %v629_v26  ;;  %2552 = vmatprep.subr.mxu0 %v2864_v46 }
  0x2b   :  { %2587 = vmatprep.subr.mxu1 %v2864_v46  ;;  %2553 = vmatpush3.msra.mxu0 %v650_v27 }
  0x2c   :  { %2247 = vmatmul.mubr.msk.f32.gmra.mxu0 %vm160_vm2, %v112_v18  ;;  %2588 = vmatpush3.msra.mxu1 %v628_v28  ;;  %v494_v18 = vrot.slane %v2249_v9, %v3278_v7 }
  0x2d   :  { %473 = vmatprep.mubr.f32.mxu0 %v2864_v46  ;;  %2554 = vmatprep.subr.mxu0 %v2864_v46 }
  0x2e   :  { %2589 = vmatprep.subr.mxu1 %v2864_v46  ;;  %2555 = vmatpush3.msra.mxu0 %v649_v29 }
  0x2f   :  { %2590 = vmatpush3.msra.mxu1 %v627_v30  ;;  %2556 = vmatprep.subr.mxu0 %v2864_v46 }
  0x30   :  { %2248 = vmatmul.mubr.msk.f32.gmra.mxu0 %vm160_vm2, %v127_v20  ;;  %2591 = vmatprep.subr.mxu1 %v2864_v46 }
  0x31   :  { %2580 = vmatprep.mubr.msk.f32.mxu0 %vm2865_vm7, %v2864_v46  ;;  %2557 = vmatpush3.msra.mxu0 %v648_v31 }
  0x32   :  { %2592 = vmatpush3.msra.mxu1 %v626_v32  ;;  %2558 = vmatprep.subr.mxu0 %v2864_v46 }
  0x33   :  { %2593 = vmatprep.subr.mxu1 %v2864_v46  ;;  %2559 = vmatpush3.msra.mxu0 %v647_v33 }
  0x34   :  { %2594 = vmatpush3.msra.mxu1 %v625_v34  ;;  %2560 = vmatprep.subr.mxu0 %v2864_v46 }
  0x35   :  { %2595 = vmatprep.subr.mxu1 %v2864_v46  ;;  %2561 = vmatpush3.msra.mxu0 %v646_v35 }
  0x36   :  { %2596 = vmatpush3.msra.mxu1 %v624_v36  ;;  %2562 = vmatprep.subr.mxu0 %v2864_v46 }
  0x37   :  { %2597 = vmatprep.subr.mxu1 %v2864_v46  ;;  %2563 = vmatpush3.msra.mxu0 %v645_v37 }
  0x38   :  { %2598 = vmatpush3.msra.mxu1 %v623_v38  ;;  %2564 = vmatprep.subr.mxu0 %v2864_v46 }
  0x39   :  { %2599 = vmatprep.subr.mxu1 %v2864_v46  ;;  %2565 = vmatpush3.msra.mxu0 %v644_v39 }
  0x3a   :  { %2600 = vmatpush3.msra.mxu1 %v622_v40  ;;  %2566 = vmatprep.subr.mxu0 %v2864_v46 }
  0x3b   :  { %2601 = vmatprep.subr.mxu1 %v2864_v46  ;;  %2567 = vmatpush3.msra.mxu0 %v643_v41 }
  0x3c   :  { %2602 = vmatpush3.msra.mxu1 %v621_v42  ;;  %2568 = vmatprep.subr.mxu0 %v2864_v46 }
  0x3d   :  { %2603 = vmatprep.subr.mxu1 %v2864_v46  ;;  %2569 = vmatpush3.msra.mxu0 %v642_v43 }
  0x3e   :  { %2604 = vmatpush3.msra.mxu1 %v620_v44  ;;  %2570 = vmatprep.subr.mxu0 %v2864_v46 }
  0x3f   :  { %2605 = vmatprep.subr.mxu1 %v2864_v46  ;;  %2571 = vmatpush3.msra.mxu0 %v641_v45 }
  0x40   :  { %2606 = vmatpush3.msra.mxu1 %v619_v47  ;;  %2572 = vmatprep.subr.mxu0 %v2864_v46 }
  0x41   :  { %2607 = vmatprep.subr.mxu1 %v2864_v46  ;;  %2573 = vmatpush3.msra.mxu0 %v640_v48 }
  0x42   :  { %2608 = vmatpush3.msra.mxu1 %v618_v49  ;;  %2574 = vmatprep.subr.mxu0 %v2864_v46 }
  0x43   :  { %2609 = vmatprep.subr.mxu1 %v2864_v46  ;;  %2575 = vmatpush3.msra.mxu0 %v639_v50 }
  0x44   :  { %2610 = vmatpush3.msra.mxu1 %v617_v51  ;;  %2576 = vmatprep.subr.mxu0 %v2864_v46 }
  0x45   :  { %2611 = vmatprep.subr.mxu1 %v2864_v46  ;;  %2577 = vmatpush3.msra.mxu0 %v638_v52 }
  0x46   :  { %2612 = vmatpush3.msra.mxu1 %v616_v53  ;;  %2578 = vmatprep.subr.mxu0 %v2864_v46 }
  0x47   :  { %2613 = vmatprep.subr.mxu1 %v2864_v46  ;;  %2579 = vmatpush3.msra.mxu0 %v637_v54 }
  0x48   :  { %2614 = vmatpush3.msra.mxu1 %v615_v55  ;;  %2615 = vmatprep.mubr.msk.f32.mxu1 %vm2865_vm7, %v2864_v46 }
  0x49   :  { %2618 = vmatprep.subr.mxu0 %v2864_v46  ;;  %2653 = vmatprep.subr.mxu1 %v2864_v46 }
  0xd3   :  { %v239_v56 = vpop.f32.mrf.mxu0  ;;  %v340_v57 = vpop.f32.mrf.mxu1 }
  0xd4   :  { %v341_v10 = vadd.f32 %v340_v57, %v239_v56 }
  0xd5   :  { %v241_v58 = vpop.f32.mrf.mxu0  ;;  %v342_v59 = vpop.f32.mrf.mxu1 }
  0xd6   :  { %v343_v8 = vadd.f32 %v342_v59, %v241_v58 }
  0xd7   :  { %v346_v61 = vpop.f32.mrf.mxu1 }
  0xd8   :  { %v245_v60 = vpop.f32.mrf.mxu0 }
  0xd9   :  { %v348_v0 = vpop.f32.mrf.mxu1  ;;  %v347_v14 = vadd.f32 %v346_v61, %v245_v60 }
  0xda   :  { %v247_v62 = vpop.f32.mrf.mxu0 }
  0xdb   :  { %v352_v3 = vpop.f32.mrf.mxu1  ;;  %v349_v20 = vadd.f32 %v348_v0, %v247_v62 }
  0xdc   :  { %v251_v63 = vpop.f32.mrf.mxu0 }
  0xdd   :  { %v354_v11 = vpop.f32.mrf.mxu1  ;;  %v353_v25 = vadd.f32 %v352_v3, %v251_v63 }
  0xde   :  { %v253_v1 = vpop.f32.mrf.mxu0 }
  0xdf   :  { %v358_v22 = vpop.f32.mrf.mxu1  ;;  %v355_v30 = vadd.f32 %v354_v11, %v253_v1 }
  0xe0   :  { %v257_v2 = vpop.f32.mrf.mxu0 }
  0xe1   :  { %v359_v33 = vadd.f32 %v358_v22, %v257_v2  ;;  %v360_v34 = vpop.f32.mrf.mxu1 }
  0xe2   :  { %v259_v4 = vpop.f32.mrf.mxu0 }
  0xe3   :  { %v361_v43 = vadd.f32 %v360_v34, %v259_v4  ;;  %v809_v34 = vld [vmem:[%s4278_s4 + $0x158] sm:$0xff] }
  0xe4   :  { %v457_v6 = vpop.f32.mrf.mxu0 }
  0xe5   :  { %v480_v17 = vadd.f32 %v457_v6, %v341_v10 }
  0xe6   :  { %v459_v12 = vpop.f32.mrf.mxu0 }
  0xe7   :  { %v481_v16 = vadd.f32 %v459_v12, %v343_v8  ;;  %v501_v28 = vadd.f32 %v494_v18, %v480_v17 }
  0xe8   :  { %v463_v19 = vpop.f32.mrf.mxu0 }
  0xe9   :  { %v482_v21 = vadd.f32 %v463_v19, %v347_v14  ;;  %v502_v23 = vadd.f32 %v498_v13, %v481_v16  ;;  %v509_v41 = vmax.f32 %v501_v28, 0.0  ;;  %v813_v14 = vld [vmem:[%s4278_s4 + $0x178] sm:$0xff] }
  0xea   :  { %v465_v24 = vpop.f32.mrf.mxu0  ;;  %v905_v16 = vld [vmem:[%s4278_s4 + $0x1f8] sm:$0xff] }
  0xeb   :  { %v503_v26 = vadd.f32 %v494_v18, %v482_v21  ;;  %v483_v27 = vadd.f32 %v465_v24, %v349_v20  ;;  %v510_v35 = vmax.f32 %v502_v23, 0.0  ;;  %v812_v24 = vld [vmem:[%s4278_s4 + $0x170] sm:$0xff] }
  0xec   :  { %v469_v29 = vpop.f32.mrf.mxu0 }
  0xed   :  { %v504_v31 = vadd.f32 %v498_v13, %v483_v27  ;;  %v484_v32 = vadd.f32 %v469_v29, %v353_v25  ;;  %v511_v37 = vmax.f32 %v503_v26, 0.0  ;;  %v517_v48 = vmax.f32 %v509_v41, %v510_v35  ;;  %v904_v25 = vld [vmem:[%s4278_s4 + $0x1f0] sm:$0xff]  ;;  %v901_v35 = vld [vmem:[%s4278_s4 + $0x1d8] sm:$0xff]  ;;  %v898_v41 = vld [vmem:[%s4278_s4 + $0x1c0] sm:$0xff] }
  0xee   :  { %v471_v36 = vpop.f32.mrf.mxu0 }
  0xef   :  { %v512_v38 = vmax.f32 %v504_v31, 0.0  ;;  %v505_v39 = vadd.f32 %v494_v18, %v484_v32  ;;  %v485_v40 = vadd.f32 %v471_v36, %v355_v30  ;;  %v521_v57 = vrot.slane %v517_v48, 1  ;;  %v811_v30 = vld [vmem:[%s4278_s4 + $0x168] sm:$0xff]  ;;  %v810_v32 = vld [vmem:[%s4278_s4 + $0x160] sm:$0xff]  ;;  %v808_v36 = vld [vmem:[%s4278_s4 + $0x150] sm:$0xff] }
  0xf0   :  { %v475_v42 = vpop.f32.mrf.mxu0  ;;  %v903_v31 = vld [vmem:[%s4278_s4 + $0x1e8] sm:$0xff] }
  0xf1   :  { %v518_v44 = vmax.f32 %v511_v37, %v512_v38  ;;  %v506_v45 = vadd.f32 %v498_v13, %v485_v40  ;;  %v486_v47 = vadd.f32 %v475_v42, %v359_v33  ;;  %v513_v50 = vmax.f32 %v505_v39, 0.0  ;;  %v902_v33 = vld [vmem:[%s4278_s4 + $0x1e0] sm:$0xff]  ;;  %v900_v37 = vld [vmem:[%s4278_s4 + $0x1d0] sm:$0xff]  ;;  %v807_v38 = vld [vmem:[%s4278_s4 + $0x148] sm:$0xff] }
  0xf2   :  { %v477_v49 = vpop.f32.mrf.mxu0  ;;  %v899_v39 = vld [vmem:[%s4278_s4 + $0x1c8] sm:$0xff]  ;;  %v806_v40 = vld [vmem:[%s4278_s4 + $0x140] sm:$0xff]  ;;  %v805_v42 = vld [vmem:[%s4278_s4 + $0x138] sm:$0xff] }
  0xf3   :  { %v514_v51 = vmax.f32 %v506_v45, 0.0  ;;  %v507_v52 = vadd.f32 %v494_v18, %v486_v47  ;;  %v487_v53 = vadd.f32 %v477_v49, %v361_v43  ;;  %v522_v54 = vrot.slane %v518_v44, 1  ;;  %v897_v43 = vld [vmem:[%s4278_s4 + $0x1b8] sm:$0xff]  ;;  %v896_v45 = vld [vmem:[%s4278_s4 + $0x1b0] sm:$0xff]  ;;  %v803_v47 = vld [vmem:[%s4278_s4 + $0x128] sm:$0xff] }
  0xf4   :  { %v802_v49 = vld [vmem:[%s4278_s4 + $0x120] sm:$0xff] }
  0xf5   :  { %v519_v55 = vmax.f32 %v513_v50, %v514_v51  ;;  %v508_v56 = vadd.f32 %v498_v13, %v487_v53  ;;  %v515_v59 = vmax.f32 %v507_v52, 0.0  ;;  %v527_v61 = vsel %vm111_vm4, %v521_v57, %v522_v54  ;;  %v894_v50 = vld [vmem:[%s4278_s4 + $0x1a0] sm:$0xff]  ;;  %v801_v51 = vld [vmem:[%s4278_s4 + $0x118] sm:$0xff]  ;;  %v800_v53 = vld [vmem:[%s4278_s4 + $0x110] sm:$0xff] }
  0xf6   :  { %v3290_v1 = vmax.f32 %v517_v48, %v527_v61  ;;  %v895_v48 = vld [vmem:[%s4278_s4 + $0x1a8] sm:$0xff]  ;;  %v893_v52 = vld [vmem:[%s4278_s4 + $0x198] sm:$0xff] }
  0xf7   :  { %v523_v58 = vrot.slane %v519_v55, 1  ;;  %v516_v60 = vmax.f32 %v508_v56, 0.0  ;;  %v891_v56 = vld [vmem:[%s4278_s4 + $0x188] sm:$0xff] }
  0xf8   :  { %v632_v9 = vrot.slane %v3290_v1, 2  ;;  %v793_v61 = vrot.slane %v3290_v1, 4 }
  0xf9   :  { %v526_v62 = vsel %vm111_vm4, %v522_v54, %v523_v58  ;;  %v520_v63 = vmax.f32 %v515_v59, %v516_v60  ;;  %v892_v54 = vld [vmem:[%s4278_s4 + $0x190] sm:$0xff]  ;;  %v890_v60 = vld [vmem:[%s4278_s4 + $0x180] sm:$0xff] }
  0xfa   :  { %v530_v0 = vmax.f32 %v518_v44, %v526_v62  ;;  %v804_v44 = vld [vmem:[%s4278_s4 + $0x130] sm:$0xff]  ;;  %v885_v62 = vrot.slane %v3290_v1, 6 }
  0xfb   :  { %v524_v2 = vrot.slane %v520_v63, 1 }
  0xfc   :  { %v1069_v12 = vrot.slane %v530_v0, 2  ;;  %v1161_v13 = vrot.slane %v530_v0, 4  ;;  %v1253_v23 = vrot.slane %v530_v0, 6 }
  0xfd   :  { %v525_v3 = vsel %vm111_vm4, %v523_v58, %v524_v2  ;;  %v528_v4 = vsel %vm111_vm4, %v524_v2, %v521_v57  ;;  %v798_v57 = vld [vmem:[%s4278_s4 + $0x100] sm:$0xff]  ;;  %v996_v2 = vld [vmem:[%s4278_s4 + $0x278] sm:$0xff] }
  0xfe   :  { %v3296_v6 = vmax.f32 %v519_v55, %v525_v3  ;;  %v532_v8 = vmax.f32 %v520_v63, %v528_v4  ;;  %v799_v55 = vld [vmem:[%s4278_s4 + $0x108] sm:$0xff]  ;;  %v3458_v3 = vpop.f32.mrf.mxu1  ;;  %v995_v4 = vld [vmem:[%s4278_s4 + $0x270] sm:$0xff] }
 0x100   :  { %v634_v10 = vrot.slane %v3296_v6, 1  ;;  %v611_v11 = vrot.slane %v3296_v6, 7  ;;  %v978_v17 = vrot.slane %v532_v8, 7  ;;  %v1071_v18 = vrot.slane %v532_v8, 1 }
 0x101   :  { %v1163_v19 = vrot.slane %v532_v8, 3  ;;  %v1255_v20 = vrot.slane %v532_v8, 5  ;;  %v795_v58 = vrot.slane %v3296_v6, 3  ;;  %v887_v59 = vrot.slane %v3296_v6, 5  ;;  %v1088_v6 = vld [vmem:[%s4278_s4 + $0x2f0] sm:$0xff]  ;;  %v2547_v8 = vpop.f32.mrf.mxu1 }
 0x102   :  { %v636_v21 = vsel %vm613_vm9, %v632_v9, %v634_v10  ;;  %v614_v22 = vsel %vm613_vm9, %v3290_v1, %v611_v11  ;;  %v3317_v26 = vsel %vm613_vm9, %v530_v0, %v978_v17  ;;  %v3320_v27 = vsel %vm613_vm9, %v1069_v12, %v1071_v18  ;;  %v1089_v1 = vld [vmem:[%s4278_s4 + $0x2f8] sm:$0xff]  ;;  %v994_v9 = vld [vmem:[%s4278_s4 + $0x268] sm:$0xff]  ;;  %v993_v11 = vld [vmem:[%s4278_s4 + $0x260] sm:$0xff] }
 0x103   :  { %2581 = vmatmul.mubr.f32.vlgmr.msra.gmra.mxu0 %v636_v21  ;;  %2616 = vmatmul.mubr.f32.vlgmr.msra.gmra.mxu1 %v614_v22  ;;  %v3323_v28 = vsel %vm613_vm9, %v1161_v13, %v1163_v19  ;;  %v3326_v29 = vsel %vm613_vm9, %v1253_v23, %v1255_v20  ;;  %v797_v63 = vsel %vm613_vm9, %v793_v61, %v795_v58  ;;  %v1087_v10 = vld [vmem:[%s4278_s4 + $0x2e8] sm:$0xff]  ;;  %v1086_v12 = vld [vmem:[%s4278_s4 + $0x2e0] sm:$0xff]  ;;  %v992_v13 = vld [vmem:[%s4278_s4 + $0x258] sm:$0xff] }
 0x104   :  { %2619 = vmatpush3.msra.mxu0 %v813_v14  ;;  %2654 = vmatpush3.msra.mxu1 %v905_v16  ;;  %v889_v0 = vsel %vm613_vm9, %v885_v62, %v887_v59  ;;  %v1085_v14 = vld [vmem:[%s4278_s4 + $0x2d8] sm:$0xff]  ;;  %v991_v16 = vld [vmem:[%s4278_s4 + $0x250] sm:$0xff]  ;;  %v990_v18 = vld [vmem:[%s4278_s4 + $0x248] sm:$0xff] }
 0x105   :  { %2620 = vmatprep.subr.mxu0 %v2864_v46  ;;  %2655 = vmatprep.subr.mxu1 %v2864_v46  ;;  %v1084_v17 = vld [vmem:[%s4278_s4 + $0x2d0] sm:$0xff]  ;;  %v1083_v19 = vld [vmem:[%s4278_s4 + $0x2c8] sm:$0xff]  ;;  %v989_v20 = vld [vmem:[%s4278_s4 + $0x240] sm:$0xff] }
 0x106   :  { %2621 = vmatpush3.msra.mxu0 %v812_v24  ;;  %2656 = vmatpush3.msra.mxu1 %v904_v25  ;;  %v1082_v21 = vld [vmem:[%s4278_s4 + $0x2c0] sm:$0xff]  ;;  %v988_v22 = vld [vmem:[%s4278_s4 + $0x238] sm:$0xff]  ;;  %v987_v24 = vld [vmem:[%s4278_s4 + $0x230] sm:$0xff] }
 0x107   :  { %2622 = vmatprep.subr.mxu0 %v2864_v46  ;;  %2657 = vmatprep.subr.mxu1 %v2864_v46  ;;  %v1081_v23 = vld [vmem:[%s4278_s4 + $0x2b8] sm:$0xff]  ;;  %v1080_v25 = vld [vmem:[%s4278_s4 + $0x2b0] sm:$0xff]  ;;  %v1171_v61 = vld [vmem:[%s4278_s4 + $0x328] sm:$0xff] }
 0x108   :  { %2623 = vmatpush3.msra.mxu0 %v811_v30  ;;  %2658 = vmatpush3.msra.mxu1 %v903_v31  ;;  %v986_v30 = vld [vmem:[%s4278_s4 + $0x228] sm:$0xff]  ;;  %v1265_v58 = vld [vmem:[%s4278_s4 + $0x3b8] sm:$0xff]  ;;  %v1172_v59 = vld [vmem:[%s4278_s4 + $0x330] sm:$0xff] }
 0x109   :  { %2624 = vmatprep.subr.mxu0 %v2864_v46  ;;  %2659 = vmatprep.subr.mxu1 %v2864_v46  ;;  %v1079_v31 = vld [vmem:[%s4278_s4 + $0x2a8] sm:$0xff] }
 0x10a   :  { %2625 = vmatpush3.msra.mxu0 %v810_v32  ;;  %2660 = vmatpush3.msra.mxu1 %v902_v33  ;;  %v985_v32 = vld [vmem:[%s4278_s4 + $0x220] sm:$0xff]  ;;  %v1263_v62 = vld [vmem:[%s4278_s4 + $0x3a8] sm:$0xff] }
 0x10b   :  { %2626 = vmatprep.subr.mxu0 %v2864_v46  ;;  %2661 = vmatprep.subr.mxu1 %v2864_v46  ;;  %v1078_v33 = vld [vmem:[%s4278_s4 + $0x2a0] sm:$0xff]  ;;  %v1167_v8 = vld [vmem:[%s4278_s4 + $0x308] sm:$0xff] }
 0x10c   :  { %2627 = vmatpush3.msra.mxu0 %v809_v34  ;;  %2662 = vmatpush3.msra.mxu1 %v901_v35  ;;  %v984_v34 = vld [vmem:[%s4278_s4 + $0x218] sm:$0xff] }
 0x10d   :  { %2628 = vmatprep.subr.mxu0 %v2864_v46  ;;  %2663 = vmatprep.subr.mxu1 %v2864_v46  ;;  %v1077_v35 = vld [vmem:[%s4278_s4 + $0x298] sm:$0xff] }
 0x10e   :  { %2629 = vmatpush3.msra.mxu0 %v808_v36  ;;  %2664 = vmatpush3.msra.mxu1 %v900_v37  ;;  %v983_v36 = vld [vmem:[%s4278_s4 + $0x210] sm:$0xff] }
 0x10f   :  { %2630 = vmatprep.subr.mxu0 %v2864_v46  ;;  %2665 = vmatprep.subr.mxu1 %v2864_v46  ;;  %v1076_v37 = vld [vmem:[%s4278_s4 + $0x290] sm:$0xff] }
 0x110   :  { %2631 = vmatpush3.msra.mxu0 %v807_v38  ;;  %2666 = vmatpush3.msra.mxu1 %v899_v39  ;;  %v982_v38 = vld [vmem:[%s4278_s4 + $0x208] sm:$0xff] }
 0x111   :  { %2632 = vmatprep.subr.mxu0 %v2864_v46  ;;  %2667 = vmatprep.subr.mxu1 %v2864_v46  ;;  %v1075_v39 = vld [vmem:[%s4278_s4 + $0x288] sm:$0xff] }
 0x112   :  { %2633 = vmatpush3.msra.mxu0 %v806_v40  ;;  %2668 = vmatpush3.msra.mxu1 %v898_v41  ;;  %v981_v40 = vld [vmem:[%s4278_s4 + $0x200] sm:$0xff] }
 0x113   :  { %2634 = vmatprep.subr.mxu0 %v2864_v46  ;;  %2669 = vmatprep.subr.mxu1 %v2864_v46  ;;  %v1074_v41 = vld [vmem:[%s4278_s4 + $0x280] sm:$0xff] }
 0x114   :  { %2635 = vmatpush3.msra.mxu0 %v805_v42  ;;  %2670 = vmatpush3.msra.mxu1 %v897_v43  ;;  %v1181_v42 = vld [vmem:[%s4278_s4 + $0x378] sm:$0xff] }
 0x115   :  { %2636 = vmatprep.subr.mxu0 %v2864_v46  ;;  %2671 = vmatprep.subr.mxu1 %v2864_v46  ;;  %v1273_v43 = vld [vmem:[%s4278_s4 + $0x3f8] sm:$0xff] }
 0x116   :  { %2637 = vmatpush3.msra.mxu0 %v804_v44  ;;  %2672 = vmatpush3.msra.mxu1 %v896_v45  ;;  %v1180_v44 = vld [vmem:[%s4278_s4 + $0x370] sm:$0xff] }
 0x117   :  { %2638 = vmatprep.subr.mxu0 %v2864_v46  ;;  %2673 = vmatprep.subr.mxu1 %v2864_v46  ;;  %v1272_v45 = vld [vmem:[%s4278_s4 + $0x3f0] sm:$0xff] }
 0x118   :  { %2639 = vmatpush3.msra.mxu0 %v803_v47  ;;  %2674 = vmatpush3.msra.mxu1 %v895_v48  ;;  %v1178_v47 = vld [vmem:[%s4278_s4 + $0x360] sm:$0xff] }
 0x119   :  { %2640 = vmatprep.subr.mxu0 %v2864_v46  ;;  %2675 = vmatprep.subr.mxu1 %v2864_v46  ;;  %v1270_v48 = vld [vmem:[%s4278_s4 + $0x3e0] sm:$0xff] }
 0x11a   :  { %2641 = vmatpush3.msra.mxu0 %v802_v49  ;;  %2676 = vmatpush3.msra.mxu1 %v894_v50  ;;  %v1177_v49 = vld [vmem:[%s4278_s4 + $0x358] sm:$0xff] }
 0x11b   :  { %2642 = vmatprep.subr.mxu0 %v2864_v46  ;;  %2677 = vmatprep.subr.mxu1 %v2864_v46  ;;  %v1269_v50 = vld [vmem:[%s4278_s4 + $0x3d8] sm:$0xff] }
 0x11c   :  { %2643 = vmatpush3.msra.mxu0 %v801_v51  ;;  %2678 = vmatpush3.msra.mxu1 %v893_v52  ;;  %v1176_v51 = vld [vmem:[%s4278_s4 + $0x350] sm:$0xff] }
 0x11d   :  { %2644 = vmatprep.subr.mxu0 %v2864_v46  ;;  %2679 = vmatprep.subr.mxu1 %v2864_v46  ;;  %v1268_v52 = vld [vmem:[%s4278_s4 + $0x3d0] sm:$0xff] }
 0x11e   :  { %2645 = vmatpush3.msra.mxu0 %v800_v53  ;;  %2680 = vmatpush3.msra.mxu1 %v892_v54  ;;  %v1175_v53 = vld [vmem:[%s4278_s4 + $0x348] sm:$0xff] }
 0x11f   :  { %2646 = vmatprep.subr.mxu0 %v2864_v46  ;;  %2681 = vmatprep.subr.mxu1 %v2864_v46  ;;  %v1267_v54 = vld [vmem:[%s4278_s4 + $0x3c8] sm:$0xff] }
 0x120   :  { %2647 = vmatpush3.msra.mxu0 %v799_v55  ;;  %2682 = vmatpush3.msra.mxu1 %v891_v56  ;;  %v1174_v55 = vld [vmem:[%s4278_s4 + $0x340] sm:$0xff] }
 0x121   :  { %2648 = vmatprep.subr.mxu0 %v2864_v46  ;;  %2683 = vmatprep.subr.mxu1 %v2864_v46  ;;  %v1266_v56 = vld [vmem:[%s4278_s4 + $0x3c0] sm:$0xff] }
 0x122   :  { %2649 = vmatpush3.msra.mxu0 %v798_v57  ;;  %2650 = vmatprep.mubr.msk.f32.mxu0 %vm2865_vm7, %v2864_v46  ;;  %v1173_v57 = vld [vmem:[%s4278_s4 + $0x338] sm:$0xff] }
 0x123   :  { %2684 = vmatpush3.msra.mxu1 %v890_v60  ;;  %2685 = vmatprep.mubr.msk.f32.mxu1 %vm2865_vm7, %v2864_v46  ;;  %v1264_v60 = vld [vmem:[%s4278_s4 + $0x3b0] sm:$0xff] }
 0x124   :  { %2651 = vmatmul.mubr.f32.vlgmr.msra.gmra.mxu0 %v797_v63  ;;  %2686 = vmatmul.mubr.f32.vlgmr.msra.gmra.mxu1 %v889_v0  ;;  %v1170_v63 = vld [vmem:[%s4278_s4 + $0x320] sm:$0xff] }
 0x125   :  { %2688 = vmatprep.subr.mxu0 %v2864_v46  ;;  %2723 = vmatprep.subr.mxu1 %v2864_v46  ;;  %v1262_v0 = vld [vmem:[%s4278_s4 + $0x3a0] sm:$0xff] }
 0x126   :  { %2689 = vmatpush3.msra.mxu0 %v996_v2  ;;  %2724 = vmatpush3.msra.mxu1 %v1089_v1  ;;  %v1169_v2 = vld [vmem:[%s4278_s4 + $0x318] sm:$0xff] }
 0x127   :  { %2690 = vmatprep.subr.mxu0 %v2864_v46  ;;  %2725 = vmatprep.subr.mxu1 %v2864_v46  ;;  %v1261_v1 = vld [vmem:[%s4278_s4 + $0x398] sm:$0xff] }
 0x128   :  { %2691 = vmatpush3.msra.mxu0 %v995_v4  ;;  %2726 = vmatpush3.msra.mxu1 %v1088_v6  ;;  %v1168_v4 = vld [vmem:[%s4278_s4 + $0x310] sm:$0xff] }
 0x129   :  { %2692 = vmatprep.subr.mxu0 %v2864_v46  ;;  %2727 = vmatprep.subr.mxu1 %v2864_v46  ;;  %v1260_v6 = vld [vmem:[%s4278_s4 + $0x390] sm:$0xff] }
 0x12a   :  { %2693 = vmatpush3.msra.mxu0 %v994_v9  ;;  %2728 = vmatpush3.msra.mxu1 %v1087_v10  ;;  %v1259_v9 = vld [vmem:[%s4278_s4 + $0x388] sm:$0xff]  ;;  %v1166_v10 = vld [vmem:[%s4278_s4 + $0x300] sm:$0xff] }
 0x12b   :  { %2694 = vmatprep.subr.mxu0 %v2864_v46  ;;  %2729 = vmatprep.subr.mxu1 %v2864_v46 }
 0x12c   :  { %2695 = vmatpush3.msra.mxu0 %v993_v11  ;;  %2730 = vmatpush3.msra.mxu1 %v1086_v12  ;;  %v1258_v11 = vld [vmem:[%s4278_s4 + $0x380] sm:$0xff] }
 0x12d   :  { %2696 = vmatprep.subr.mxu0 %v2864_v46  ;;  %2731 = vmatprep.subr.mxu1 %v2864_v46  ;;  %v1354_v12 = vld [vmem:[%s4278_s4 + $0x420] sm:$0xff] }
 0x12e   :  { %2697 = vmatpush3.msra.mxu0 %v992_v13  ;;  %2732 = vmatpush3.msra.mxu1 %v1085_v14  ;;  %v1351_v13 = vld [vmem:[%s4278_s4 + $0x408] sm:$0xff] }
 0x12f   :  { %2698 = vmatprep.subr.mxu0 %v2864_v46  ;;  %2733 = vmatprep.subr.mxu1 %v2864_v46  ;;  %v1460_v14 = vld [vmem:[%s4277_s3 + $0xc8] sm:$0xff] }
 0x130   :  { %2699 = vmatpush3.msra.mxu0 %v991_v16  ;;  %2734 = vmatpush3.msra.mxu1 %v1084_v17  ;;  %v1462_v16 = vld [vmem:[%s4277_s3 + $0xd8] sm:$0xff]  ;;  %v1459_v17 = vld [vmem:[%s4277_s3 + $0xc0] sm:$0xff] }
 0x131   :  { %2700 = vmatprep.subr.mxu0 %v2864_v46  ;;  %2735 = vmatprep.subr.mxu1 %v2864_v46 }
 0x132   :  { %2701 = vmatpush3.msra.mxu0 %v990_v18  ;;  %2736 = vmatpush3.msra.mxu1 %v1083_v19  ;;  %v1452_v18 = vld [vmem:[%s4277_s3 + $0x88] sm:$0xff]  ;;  %v1451_v19 = vld [vmem:[%s4277_s3 + $0x80] sm:$0xff] }
 0x133   :  { %2702 = vmatprep.subr.mxu0 %v2864_v46  ;;  %2737 = vmatprep.subr.mxu1 %v2864_v46 }
 0x134   :  { %2703 = vmatpush3.msra.mxu0 %v989_v20  ;;  %2738 = vmatpush3.msra.mxu1 %v1082_v21 }
 0x135   :  { %2704 = vmatprep.subr.mxu0 %v2864_v46  ;;  %2739 = vmatprep.subr.mxu1 %v2864_v46 }
 0x136   :  { %2705 = vmatpush3.msra.mxu0 %v988_v22  ;;  %2740 = vmatpush3.msra.mxu1 %v1081_v23 }
 0x137   :  { %2706 = vmatprep.subr.mxu0 %v2864_v46  ;;  %2741 = vmatprep.subr.mxu1 %v2864_v46 }
 0x138   :  { %2707 = vmatpush3.msra.mxu0 %v987_v24  ;;  %2742 = vmatpush3.msra.mxu1 %v1080_v25 }
 0x139   :  { %2708 = vmatprep.subr.mxu0 %v2864_v46  ;;  %2743 = vmatprep.subr.mxu1 %v2864_v46 }
 0x13a   :  { %2709 = vmatpush3.msra.mxu0 %v986_v30  ;;  %2744 = vmatpush3.msra.mxu1 %v1079_v31 }
 0x13b   :  { %2710 = vmatprep.subr.mxu0 %v2864_v46  ;;  %2745 = vmatprep.subr.mxu1 %v2864_v46 }
 0x13c   :  { %2711 = vmatpush3.msra.mxu0 %v985_v32  ;;  %2746 = vmatpush3.msra.mxu1 %v1078_v33 }
 0x13d   :  { %2712 = vmatprep.subr.mxu0 %v2864_v46  ;;  %2747 = vmatprep.subr.mxu1 %v2864_v46 }
 0x13e   :  { %2713 = vmatpush3.msra.mxu0 %v984_v34  ;;  %2748 = vmatpush3.msra.mxu1 %v1077_v35 }
 0x13f   :  { %2714 = vmatprep.subr.mxu0 %v2864_v46  ;;  %2749 = vmatprep.subr.mxu1 %v2864_v46 }
 0x140   :  { %2715 = vmatpush3.msra.mxu0 %v983_v36  ;;  %2750 = vmatpush3.msra.mxu1 %v1076_v37 }
 0x141   :  { %2716 = vmatprep.subr.mxu0 %v2864_v46  ;;  %2751 = vmatprep.subr.mxu1 %v2864_v46 }
 0x142   :  { %2717 = vmatpush3.msra.mxu0 %v982_v38  ;;  %2752 = vmatpush3.msra.mxu1 %v1075_v39 }
 0x143   :  { %2718 = vmatprep.subr.mxu0 %v2864_v46  ;;  %2753 = vmatprep.subr.mxu1 %v2864_v46 }
 0x144   :  { %2719 = vmatpush3.msra.mxu0 %v981_v40  ;;  %2720 = vmatprep.mubr.msk.f32.mxu0 %vm2865_vm7, %v2864_v46  ;;  %v535_v40 = vld [vmem:[%s4278_s4 + $0x828] sm:$0x1] }
 0x145   :  { %2754 = vmatpush3.msra.mxu1 %v1074_v41  ;;  %2755 = vmatprep.mubr.msk.f32.mxu1 %vm2865_vm7, %v2864_v46  ;;  %v607_v41 = vadd.f32 %v3458_v3, %v535_v40  ;;  %v1454_v3 = vld [vmem:[%s4277_s3 + $0x98] sm:$0xff]  ;;  %v1866_v40 = vld [vmem:[%s4278_s4 + $0x600] sm:$0xff] }
 0x146   :  { %2721 = vmatmul.mubr.f32.vlgmr.msra.gmra.mxu0 %v3317_v26  ;;  %2756 = vmatmul.mubr.f32.vlgmr.msra.gmra.mxu1 %v3320_v27  ;;  %v1179_v26 = vld [vmem:[%s4278_s4 + $0x368] sm:$0xff] }
 0x147   :  { %2758 = vmatprep.subr.mxu0 %v2864_v46  ;;  %2793 = vmatprep.subr.mxu1 %v2864_v46  ;;  %v1271_v27 = vld [vmem:[%s4278_s4 + $0x3e8] sm:$0xff] }
 0x148   :  { %2759 = vmatpush3.msra.mxu0 %v1181_v42  ;;  %2794 = vmatpush3.msra.mxu1 %v1273_v43 }
 0x149   :  { %2760 = vmatprep.subr.mxu0 %v2864_v46  ;;  %2795 = vmatprep.subr.mxu1 %v2864_v46 }
 0x14a   :  { %2761 = vmatpush3.msra.mxu0 %v1180_v44  ;;  %2796 = vmatpush3.msra.mxu1 %v1272_v45 }
 0x14b   :  { %2762 = vmatprep.subr.mxu0 %v2864_v46  ;;  %2797 = vmatprep.subr.mxu1 %v2864_v46 }
 0x14c   :  { %2763 = vmatpush3.msra.mxu0 %v1179_v26  ;;  %2798 = vmatpush3.msra.mxu1 %v1271_v27 }
 0x14d   :  { %2764 = vmatprep.subr.mxu0 %v2864_v46  ;;  %2799 = vmatprep.subr.mxu1 %v2864_v46 }
 0x14e   :  { %2765 = vmatpush3.msra.mxu0 %v1178_v47  ;;  %2800 = vmatpush3.msra.mxu1 %v1270_v48  ;;  %v1348_v47 = vrot.slane %v607_v41, %v3278_v7  ;;  %v1818_v41 = vld [vmem:[%s4278_s4 + $0x480] sm:$0xff] }
 0x14f   :  { %2766 = vmatprep.subr.mxu0 %v2864_v46  ;;  %2801 = vmatprep.subr.mxu1 %v2864_v46 }
 0x150   :  { %2767 = vmatpush3.msra.mxu0 %v1177_v49  ;;  %2802 = vmatpush3.msra.mxu1 %v1269_v50 }
 0x151   :  { %2768 = vmatprep.subr.mxu0 %v2864_v46  ;;  %2803 = vmatprep.subr.mxu1 %v2864_v46 }
 0x152   :  { %2769 = vmatpush3.msra.mxu0 %v1176_v51  ;;  %2804 = vmatpush3.msra.mxu1 %v1268_v52  ;;  %v1461_v51 = vld [vmem:[%s4277_s3 + $0xd0] sm:$0xff] }
 0x153   :  { %2770 = vmatprep.subr.mxu0 %v2864_v46  ;;  %2805 = vmatprep.subr.mxu1 %v2864_v46  ;;  %v1453_v52 = vld [vmem:[%s4277_s3 + $0x90] sm:$0xff] }
 0x154   :  { %2771 = vmatpush3.msra.mxu0 %v1175_v53  ;;  %2806 = vmatpush3.msra.mxu1 %v1267_v54  ;;  %v1444_v53 = vld [vmem:[%s4277_s3 + $0x48] sm:$0xff]  ;;  %v1446_v54 = vld [vmem:[%s4277_s3 + $0x58] sm:$0xff] }
 0x155   :  { %2772 = vmatprep.subr.mxu0 %v2864_v46  ;;  %2807 = vmatprep.subr.mxu1 %v2864_v46 }
 0x156   :  { %2773 = vmatpush3.msra.mxu0 %v1174_v55  ;;  %2808 = vmatpush3.msra.mxu1 %v1266_v56  ;;  %v1443_v55 = vld [vmem:[%s4277_s3 + $0x40] sm:$0xff]  ;;  %v1445_v56 = vld [vmem:[%s4277_s3 + $0x50] sm:$0xff] }
 0x157   :  { %2774 = vmatprep.subr.mxu0 %v2864_v46  ;;  %2809 = vmatprep.subr.mxu1 %v2864_v46 }
 0x158   :  { %2775 = vmatpush3.msra.mxu0 %v1173_v57  ;;  %2810 = vmatpush3.msra.mxu1 %v1265_v58  ;;  %v1436_v57 = vld [vmem:[%s4277_s3 + $0x8] sm:$0xff]  ;;  %v1438_v58 = vld [vmem:[%s4277_s3 + $0x18] sm:$0xff] }
 0x159   :  { %2776 = vmatprep.subr.mxu0 %v2864_v46  ;;  %2811 = vmatprep.subr.mxu1 %v2864_v46 }
 0x15a   :  { %2777 = vmatpush3.msra.mxu0 %v1172_v59  ;;  %2812 = vmatpush3.msra.mxu1 %v1264_v60  ;;  %v1435_v59 = vld [vmem:[%s4277_s3] sm:$0xff]  ;;  %v1437_v60 = vld [vmem:[%s4277_s3 + $0x10] sm:$0xff] }
 0x15b   :  { %2778 = vmatprep.subr.mxu0 %v2864_v46  ;;  %2813 = vmatprep.subr.mxu1 %v2864_v46 }
 0x15c   :  { %2779 = vmatpush3.msra.mxu0 %v1171_v61  ;;  %2814 = vmatpush3.msra.mxu1 %v1263_v62  ;;  %v1464_v61 = vld [vmem:[%s4277_s3 + $0xe8] sm:$0xff]  ;;  %v1466_v62 = vld [vmem:[%s4277_s3 + $0xf8] sm:$0xff] }
 0x15d   :  { %2780 = vmatprep.subr.mxu0 %v2864_v46  ;;  %2815 = vmatprep.subr.mxu1 %v2864_v46 }
 0x15e   :  { %2781 = vmatpush3.msra.mxu0 %v1170_v63  ;;  %2816 = vmatpush3.msra.mxu1 %v1262_v0  ;;  %v2251_v63 = vld [vmem:[%s4278_s4 + $0x829] ss:$0 sm:$0xff] }
 0x15f   :  { %2782 = vmatprep.subr.mxu0 %v2864_v46  ;;  %2817 = vmatprep.subr.mxu1 %v2864_v46 }
 0x160   :  { %2783 = vmatpush3.msra.mxu0 %v1169_v2  ;;  %2818 = vmatpush3.msra.mxu1 %v1261_v1 }
 0x161   :  { %2784 = vmatprep.subr.mxu0 %v2864_v46  ;;  %2819 = vmatprep.subr.mxu1 %v2864_v46 }
 0x162   :  { %2785 = vmatpush3.msra.mxu0 %v1168_v4  ;;  %2820 = vmatpush3.msra.mxu1 %v1260_v6  ;;  %v1463_v6 = vld [vmem:[%s4277_s3 + $0xe0] sm:$0xff] }
 0x163   :  { %2786 = vmatprep.subr.mxu0 %v2864_v46  ;;  %2821 = vmatprep.subr.mxu1 %v2864_v46 }
 0x164   :  { %2787 = vmatpush3.msra.mxu0 %v1167_v8  ;;  %2822 = vmatpush3.msra.mxu1 %v1259_v9  ;;  %v1465_v8 = vld [vmem:[%s4277_s3 + $0xf0] sm:$0xff]  ;;  %v1456_v9 = vld [vmem:[%s4277_s3 + $0xa8] sm:$0xff] }
 0x165   :  { %2788 = vmatprep.subr.mxu0 %v2864_v46  ;;  %2823 = vmatprep.subr.mxu1 %v2864_v46 }
 0x166   :  { %2789 = vmatpush3.msra.mxu0 %v1166_v10  ;;  %2790 = vmatprep.mubr.msk.f32.mxu0 %vm2865_vm7, %v2864_v46  ;;  %v1458_v10 = vld [vmem:[%s4277_s3 + $0xb8] sm:$0xff] }
 0x167   :  { %2824 = vmatpush3.msra.mxu1 %v1258_v11  ;;  %2825 = vmatprep.mubr.msk.f32.mxu1 %vm2865_vm7, %v2864_v46  ;;  %v1455_v11 = vld [vmem:[%s4277_s3 + $0xa0] sm:$0xff] }
 0x168   :  { %2791 = vmatmul.mubr.f32.vlgmr.msra.gmra.mxu0 %v3323_v28  ;;  %2826 = vmatmul.mubr.f32.vlgmr.msra.gmra.mxu1 %v3326_v29  ;;  %v1353_v28 = vld [vmem:[%s4278_s4 + $0x418] sm:$0xff]  ;;  %v1352_v29 = vld [vmem:[%s4278_s4 + $0x410] sm:$0xff] }
 0x169   :  { %2828 = vmatprep.subr.mxu0 %v2864_v46  ;;  %2836 = vmatprep.mubr.msk.f32.mxu0 %vm2865_vm7, %v2864_v46 }
 0x16a   :  { %1579 = vmatprep.mubr.f32.mxu1 %v2864_v46  ;;  %2829 = vmatpush3.msra.mxu0 %v1354_v12  ;;  %v1457_v12 = vld [vmem:[%s4277_s3 + $0xb0] sm:$0xff] }
 0x16b   :  { %2830 = vmatprep.subr.mxu0 %v2864_v46  ;;  %1539 = vmatprep.subr.mxu1 %v1460_v14  ;;  %v1449_v14 = vld [vmem:[%s4277_s3 + $0x70] sm:$0xff] }
 0x16c   :  { %2831 = vmatpush3.msra.mxu0 %v1353_v28  ;;  %1540 = vmatpush1.msra.mxu1 %v1459_v17  ;;  %v1448_v28 = vld [vmem:[%s4277_s3 + $0x68] sm:$0xff]  ;;  %v1442_v17 = vld [vmem:[%s4277_s3 + $0x38] sm:$0xff] }
 0x16d   :  { %2832 = vmatprep.subr.mxu0 %v2864_v46  ;;  %1541 = vmatprep.subr.mxu1 %v1452_v18  ;;  %v1439_v18 = vld [vmem:[%s4277_s3 + $0x20] sm:$0xff] }
 0x16e   :  { %2833 = vmatpush3.msra.mxu0 %v1352_v29  ;;  %1542 = vmatpush1.msra.mxu1 %v1451_v19  ;;  %v1450_v29 = vld [vmem:[%s4277_s3 + $0x78] sm:$0xff]  ;;  %v1441_v19 = vld [vmem:[%s4277_s3 + $0x30] sm:$0xff] }
 0x16f   :  { %2834 = vmatprep.subr.mxu0 %v2864_v46  ;;  %1543 = vmatprep.subr.mxu1 %v1444_v53  ;;  %v1830_v53 = vld [vmem:[%s4278_s4 + $0x4e0] sm:$0xff] }
 0x170   :  { %2835 = vmatpush3.msra.mxu0 %v1351_v13  ;;  %1544 = vmatpush1.msra.mxu1 %v1443_v55  ;;  %v1447_v13 = vld [vmem:[%s4277_s3 + $0x60] sm:$0xff] }
 0x171   :  { %1610 = vmatprep.subr.mxu0 %v1462_v16  ;;  %1545 = vmatprep.subr.mxu1 %v1436_v57  ;;  %v1440_v16 = vld [vmem:[%s4277_s3 + $0x28] sm:$0xff]  ;;  %v1814_v55 = vld [vmem:[%s4278_s4 + $0x460] sm:$0xff]  ;;  %v1829_v57 = vld [vmem:[%s4278_s4 + $0x4d8] sm:$0xff] }
 0x172   :  { %1546 = vmatpush1.msra.mxu1 %v1435_v59  ;;  %v1813_v59 = vld [vmem:[%s4278_s4 + $0x458] sm:$0xff] }
 0x173   :  { %1681 = vmatprep.subr.mxu1 %v1464_v61  ;;  %v1828_v61 = vld [vmem:[%s4278_s4 + $0x4d0] sm:$0xff] }
 0x1c3   :  { %v719_v20 = vpop.f32.mrf.mxu0  ;;  %v789_v21 = vpop.f32.mrf.mxu1 }
 0x1c4   :  { %v790_v22 = vadd.f32 %v789_v21, %v719_v20  ;;  %v1838_v20 = vld [vmem:[%s4278_s4 + $0x520] sm:$0xff] }
 0x1c5   :  { %v2582_v23 = vpop.f32.mrf.mxu0  ;;  %v2617_v24 = vpop.f32.mrf.mxu1  ;;  %v1870_v21 = vld [vmem:[%s4278_s4 + $0x620] sm:$0xff] }
 0x1c6   :  { %v1854_v23 = vld [vmem:[%s4278_s4 + $0x5a0] sm:$0xff]  ;;  %v1837_v24 = vld [vmem:[%s4278_s4 + $0x518] sm:$0xff] }
 0x1e4   :  { %v880_v25 = vpop.f32.mrf.mxu0  ;;  %v972_v30 = vpop.f32.mrf.mxu1 }
 0x1e5   :  { %v884_v37 = vadd.f32 %v880_v25, %v790_v22  ;;  %v1822_v22 = vld [vmem:[%s4278_s4 + $0x4a0] sm:$0xff]  ;;  %v1821_v25 = vld [vmem:[%s4278_s4 + $0x498] sm:$0xff] }
 0x1e6   :  { %v2652_v31 = vpop.f32.mrf.mxu0  ;;  %v2687_v32 = vpop.f32.mrf.mxu1 }
 0x1e7   :  { %v976_v38 = vadd.f32 %v972_v30, %v884_v37  ;;  %v1853_v30 = vld [vmem:[%s4278_s4 + $0x598] sm:$0xff]  ;;  %v1836_v31 = vld [vmem:[%s4278_s4 + $0x510] sm:$0xff]  ;;  %v1819_v37 = vld [vmem:[%s4278_s4 + $0x488] sm:$0xff] }
 0x1e8   :  { %v1868_v32 = vld [vmem:[%s4278_s4 + $0x610] sm:$0xff] }
 0x206   :  { %v1063_v33 = vpop.f32.mrf.mxu0  ;;  %v1156_v34 = vpop.f32.mrf.mxu1 }
 0x207   :  { %v1067_v39 = vadd.f32 %v1063_v33, %v976_v38  ;;  %v1820_v33 = vld [vmem:[%s4278_s4 + $0x490] sm:$0xff]  ;;  %v1851_v38 = vld [vmem:[%s4278_s4 + $0x588] sm:$0xff] }
 0x208   :  { %v2722_v35 = vpop.f32.mrf.mxu0  ;;  %v2757_v36 = vpop.f32.mrf.mxu1 }
 0x209   :  { %v1160_v42 = vadd.f32 %v1156_v34, %v1067_v39  ;;  %v1852_v34 = vld [vmem:[%s4278_s4 + $0x590] sm:$0xff]  ;;  %v1835_v35 = vld [vmem:[%s4278_s4 + $0x508] sm:$0xff]  ;;  %v1834_v39 = vld [vmem:[%s4278_s4 + $0x500] sm:$0xff] }
 0x20a   :  { %v1867_v36 = vld [vmem:[%s4278_s4 + $0x608] sm:$0xff] }
 0x228   :  { %v1248_v43 = vpop.f32.mrf.mxu0  ;;  %v1340_v44 = vpop.f32.mrf.mxu1 }
 0x229   :  { %v1252_v45 = vadd.f32 %v1248_v43, %v1160_v42  ;;  %v1850_v42 = vld [vmem:[%s4278_s4 + $0x580] sm:$0xff]  ;;  %v1833_v43 = vld [vmem:[%s4278_s4 + $0x4f8] sm:$0xff] }
 0x22a   :  { %v2792_v26 = vpop.f32.mrf.mxu0  ;;  %v2827_v27 = vpop.f32.mrf.mxu1 }
 0x22b   :  { %v1344_v48 = vadd.f32 %v1340_v44, %v1252_v45  ;;  %v1865_v44 = vld [vmem:[%s4278_s4 + $0x5f8] sm:$0xff]  ;;  %v1832_v27 = vld [vmem:[%s4278_s4 + $0x4f0] sm:$0xff] }
 0x22c   :  { %v1817_v45 = vld [vmem:[%s4278_s4 + $0x478] sm:$0xff] }
 0x22d   :  { %v1349_v49 = vadd.f32 %v1348_v47, %v1344_v48  ;;  %v1849_v26 = vld [vmem:[%s4278_s4 + $0x578] sm:$0xff]  ;;  %v1864_v47 = vld [vmem:[%s4278_s4 + $0x5f0] sm:$0xff] }
 0x22e   :  { %v1816_v48 = vld [vmem:[%s4278_s4 + $0x470] sm:$0xff] }
 0x22f   :  { %v1350_v50 = vmax.f32 %v1349_v49, 0.0  ;;  %v1848_v49 = vld [vmem:[%s4278_s4 + $0x570] sm:$0xff] }
 0x231   :  { %2837 = vmatmul.mubr.msk.f32.vlgmr.msra.gmra.mxu0 %vm1360_vm10, %v1350_v50  ;;  %v1831_v50 = vld [vmem:[%s4278_s4 + $0x4e8] sm:$0xff] }
 0x232   :  { %1611 = vmatpush1.msra.mxu0 %v1461_v51  ;;  %1650 = vmatprep.mubr.f32.mxu0 %v2864_v46  ;;  %v1863_v51 = vld [vmem:[%s4278_s4 + $0x5e8] sm:$0xff] }
 0x233   :  { %1612 = vmatprep.subr.mxu0 %v1454_v3  ;;  %v1815_v3 = vld [vmem:[%s4278_s4 + $0x468] sm:$0xff] }
 0x234   :  { %1613 = vmatpush1.msra.mxu0 %v1453_v52  ;;  %v1847_v52 = vld [vmem:[%s4278_s4 + $0x568] sm:$0xff] }
 0x235   :  { %1614 = vmatprep.subr.mxu0 %v1446_v54  ;;  %v1862_v54 = vld [vmem:[%s4278_s4 + $0x5e0] sm:$0xff] }
 0x236   :  { %1615 = vmatpush1.msra.mxu0 %v1445_v56  ;;  %v1846_v56 = vld [vmem:[%s4278_s4 + $0x560] sm:$0xff] }
 0x237   :  { %1616 = vmatprep.subr.mxu0 %v1438_v58  ;;  %v1861_v58 = vld [vmem:[%s4278_s4 + $0x5d8] sm:$0xff] }
 0x238   :  { %1617 = vmatpush1.msra.mxu0 %v1437_v60  ;;  %v1845_v60 = vld [vmem:[%s4278_s4 + $0x558] sm:$0xff] }
 0x239   :  { %1752 = vmatprep.subr.mxu0 %v1466_v62  ;;  %v1860_v62 = vld [vmem:[%s4278_s4 + $0x5d0] sm:$0xff] }
 0x2f1   :  { %v1430_v0 = vpop.f32.mrf.mxu0 }
 0x2f2   :  { %v1431_v2 = vadd.f32 %v2251_v63, %v1430_v0  ;;  %v1812_v63 = vld [vmem:[%s4278_s4 + $0x450] sm:$0xff] }
 0x2f3   :  { %v2838_v1 = vpop.f32.mrf.mxu0  ;;  %v1844_v0 = vld [vmem:[%s4278_s4 + $0x550] sm:$0xff] }
 0x2f4   :  { %v1434_v4 = vmax.f32 %v1431_v2, 0.0  ;;  %v1827_v2 = vld [vmem:[%s4278_s4 + $0x4c8] sm:$0xff] }
 0x2f5   :  { %v1859_v1 = vld [vmem:[%s4278_s4 + $0x5c8] sm:$0xff] }
 0x2f6   :  { %2255 = vmatmul.mubr.msk.f32.vlgmr.msra.gmra.mxu1 %vm1360_vm10, %v1434_v4  ;;  %2256 = vmatmul.mubr.msk.f32.vlgmr.msra.gmra.mxu0 %vm1360_vm10, %v1434_v4 }
 0x2f7   :  { %1682 = vmatpush1.msra.mxu1 %v1463_v6  ;;  %1753 = vmatpush1.msra.mxu0 %v1465_v8  ;;  %v1843_v6 = vld [vmem:[%s4278_s4 + $0x548] sm:$0xff]  ;;  %v1826_v8 = vld [vmem:[%s4278_s4 + $0x4c0] sm:$0xff] }
 0x2f8   :  { %1683 = vmatprep.subr.mxu1 %v1456_v9  ;;  %1754 = vmatprep.subr.mxu0 %v1458_v10  ;;  %v1858_v9 = vld [vmem:[%s4278_s4 + $0x5c0] sm:$0xff] }
 0x2f9   :  { %1684 = vmatpush1.msra.mxu1 %v1455_v11  ;;  %1755 = vmatpush1.msra.mxu0 %v1457_v12  ;;  %v1810_v10 = vld [vmem:[%s4278_s4 + $0x440] sm:$0xff]  ;;  %v1825_v12 = vld [vmem:[%s4278_s4 + $0x4b8] sm:$0xff] }
 0x2fa   :  { %1685 = vmatprep.subr.mxu1 %v1448_v28  ;;  %1756 = vmatprep.subr.mxu0 %v1450_v29  ;;  %v1842_v11 = vld [vmem:[%s4278_s4 + $0x540] sm:$0xff]  ;;  %v1857_v28 = vld [vmem:[%s4278_s4 + $0x5b8] sm:$0xff] }
 0x2fb   :  { %1686 = vmatpush1.msra.mxu1 %v1447_v13  ;;  %1757 = vmatpush1.msra.mxu0 %v1449_v14  ;;  %v1809_v29 = vld [vmem:[%s4278_s4 + $0x438] sm:$0xff]  ;;  %v1824_v14 = vld [vmem:[%s4278_s4 + $0x4b0] sm:$0xff] }
 0x2fc   :  { %1687 = vmatprep.subr.mxu1 %v1440_v16  ;;  %1758 = vmatprep.subr.mxu0 %v1442_v17  ;;  %v1841_v13 = vld [vmem:[%s4278_s4 + $0x538] sm:$0xff]  ;;  %v1856_v16 = vld [vmem:[%s4278_s4 + $0x5b0] sm:$0xff] }
 0x2fd   :  { %1688 = vmatpush1.msra.mxu1 %v1439_v18  ;;  %1721 = vmatprep.mubr.f32.mxu1 %v2864_v46  ;;  %v1808_v17 = vld [vmem:[%s4278_s4 + $0x430] sm:$0xff] }
 0x2fe   :  { %1759 = vmatpush1.msra.mxu0 %v1441_v19  ;;  %1792 = vmatprep.mubr.f32.mxu0 %v2864_v46  ;;  %v1869_v46 = vld [vmem:[%s4278_s4 + $0x618] sm:$0xff]  ;;  %v1840_v18 = vld [vmem:[%s4278_s4 + $0x530] sm:$0xff]  ;;  %v1823_v19 = vld [vmem:[%s4278_s4 + $0x4a8] sm:$0xff] }
 0x2ff   :  { %2257 = vmatmul.mubr.msk.f32.vlgmr.msra.gmra.mxu1 %vm1360_vm10, %v1434_v4  ;;  %2258 = vmatmul.mubr.msk.f32.vlgmr.msra.gmra.mxu0 %vm1360_vm10, %v1434_v4  ;;  %v1811_v4 = vld [vmem:[%s4278_s4 + $0x448] sm:$0xff] }
 0x300   :  { %2403 = vmatprep.subr.mxu1 %v1838_v20  ;;  %2438 = vmatprep.subr.mxu0 %v1870_v21  ;;  %v1855_v20 = vld [vmem:[%s4278_s4 + $0x5a8] sm:$0xff] }
 0x301   :  { %2404 = vmatpush3.msra.mxu1 %v1822_v22  ;;  %2439 = vmatpush3.msra.mxu0 %v1854_v23  ;;  %v1807_v21 = vld [vmem:[%s4278_s4 + $0x428] sm:$0xff]  ;;  %v1902_v23 = vld [vmem:[%s4278_s4 + $0x720] sm:$0xff] }
 0x302   :  { %2405 = vmatprep.subr.mxu1 %v1837_v24  ;;  %2440 = vmatprep.subr.mxu0 %v1869_v46  ;;  %v1839_v22 = vld [vmem:[%s4278_s4 + $0x528] sm:$0xff]  ;;  %v1934_v24 = vld [vmem:[%s4278_s4 + $0x820] sm:$0xff] }
 0x303   :  { %2406 = vmatpush3.msra.mxu1 %v1821_v25  ;;  %2441 = vmatpush3.msra.mxu0 %v1853_v30  ;;  %v2253_v46 = vld [vmem:[%s4277_s3 + $0x100] ss:$8 sm:$0xf] }
 0x304   :  { %2407 = vmatprep.subr.mxu1 %v1836_v31  ;;  %2442 = vmatprep.subr.mxu0 %v1868_v32  ;;  %v2254_v25 = vld [vmem:[%s4277_s3 + $0x100] ss:$8 sm:$0xf0]  ;;  %v1482_v31 = vsub.s32 2, %v2939_v15  ;;  %v1486_v32 = vsub.s32 3, %v2939_v15 }
 0x305   :  { %2408 = vmatpush3.msra.mxu1 %v1820_v33  ;;  %2443 = vmatpush3.msra.mxu0 %v1852_v34  ;;  %v4057_v30 = vor.u32 %v2254_v25, %v2253_v46  ;;  %v1894_v46 = vld [vmem:[%s4278_s4 + $0x6e0] sm:$0xff] }
 0x306   :  { %2409 = vmatprep.subr.mxu1 %v1835_v35  ;;  %2444 = vmatprep.subr.mxu0 %v1867_v36  ;;  %v1926_v25 = vld [vmem:[%s4278_s4 + $0x7e0] sm:$0xff] }
 0x307   :  { %2410 = vmatpush3.msra.mxu1 %v1819_v37  ;;  %2445 = vmatpush3.msra.mxu0 %v1851_v38  ;;  %v1475_v33 = vrot.slane %v4057_v30, %v3278_v7  ;;  %v1483_v34 = vrot.slane %v4057_v30, %v1482_v31  ;;  %v1479_v35 = vrot.slane %v4057_v30, %v497_v5  ;;  %v1502_v7 = vsub.s32 7, %v2939_v15  ;;  %v1886_v5 = vld [vmem:[%s4278_s4 + $0x6a0] sm:$0xff] }
 0x308   :  { %2411 = vmatprep.subr.mxu1 %v1834_v39  ;;  %2446 = vmatprep.subr.mxu0 %v1866_v40  ;;  %v1487_v36 = vrot.slane %v4057_v30, %v1486_v32  ;;  %v1878_v31 = vld [vmem:[%s4278_s4 + $0x660] sm:$0xff] }
 0x309   :  { %2412 = vmatpush3.msra.mxu1 %v1818_v41  ;;  %2447 = vmatpush3.msra.mxu0 %v1850_v42  ;;  %v1910_v32 = vld [vmem:[%s4278_s4 + $0x760] sm:$0xff] }
 0x30a   :  { %2413 = vmatprep.subr.mxu1 %v1833_v43  ;;  %2448 = vmatprep.subr.mxu0 %v1865_v44 }
 0x30b   :  { %2414 = vmatpush3.msra.mxu1 %v1817_v45  ;;  %2449 = vmatpush3.msra.mxu0 %v1849_v26  ;;  %v1494_v45 = vsub.s32 5, %v2939_v15 }
 0x30c   :  { %2415 = vmatprep.subr.mxu1 %v1832_v27  ;;  %2450 = vmatprep.subr.mxu0 %v1864_v47 }
 0x30d   :  { %2416 = vmatpush3.msra.mxu1 %v1816_v48  ;;  %2451 = vmatpush3.msra.mxu0 %v1848_v49  ;;  %v1918_v49 = vld [vmem:[%s4278_s4 + $0x7a0] sm:$0xff] }
 0x30e   :  { %2417 = vmatprep.subr.mxu1 %v1831_v50  ;;  %2452 = vmatprep.subr.mxu0 %v1863_v51  ;;  %v1901_v50 = vld [vmem:[%s4278_s4 + $0x718] sm:$0xff] }
 0x30f   :  { %2418 = vmatpush3.msra.mxu1 %v1815_v3  ;;  %2453 = vmatpush3.msra.mxu0 %v1847_v52  ;;  %v1933_v51 = vld [vmem:[%s4278_s4 + $0x818] sm:$0xff]  ;;  %v1495_v3 = vrot.slane %v4057_v30, %v1494_v45  ;;  %v1503_v52 = vrot.slane %v4057_v30, %v1502_v7  ;;  %v1907_v45 = vld [vmem:[%s4278_s4 + $0x748] sm:$0xff]  ;;  %v1890_v7 = vld [vmem:[%s4278_s4 + $0x6c0] sm:$0xff] }
 0x310   :  { %2419 = vmatprep.subr.mxu1 %v1830_v53  ;;  %2454 = vmatprep.subr.mxu0 %v1862_v54  ;;  %v1885_v53 = vld [vmem:[%s4278_s4 + $0x698] sm:$0xff] }
 0x311   :  { %2420 = vmatpush3.msra.mxu1 %v1814_v55  ;;  %2455 = vmatpush3.msra.mxu0 %v1846_v56  ;;  %v1917_v54 = vld [vmem:[%s4278_s4 + $0x798] sm:$0xff] }
 0x312   :  { %2421 = vmatprep.subr.mxu1 %v1829_v57  ;;  %2456 = vmatprep.subr.mxu0 %v1861_v58  ;;  %v1900_v57 = vld [vmem:[%s4278_s4 + $0x710] sm:$0xff] }
 0x313   :  { %2422 = vmatpush3.msra.mxu1 %v1813_v59  ;;  %2457 = vmatpush3.msra.mxu0 %v1845_v60  ;;  %v1932_v58 = vld [vmem:[%s4278_s4 + $0x810] sm:$0xff] }
 0x314   :  { %2423 = vmatprep.subr.mxu1 %v1828_v61  ;;  %2458 = vmatprep.subr.mxu0 %v1860_v62  ;;  %v1884_v59 = vld [vmem:[%s4278_s4 + $0x690] sm:$0xff] }
 0x315   :  { %2424 = vmatpush3.msra.mxu1 %v1812_v63  ;;  %2459 = vmatpush3.msra.mxu0 %v1844_v0  ;;  %v1916_v60 = vld [vmem:[%s4278_s4 + $0x790] sm:$0xff]  ;;  %v1899_v63 = vld [vmem:[%s4278_s4 + $0x708] sm:$0xff] }
 0x316   :  { %2425 = vmatprep.subr.mxu1 %v1827_v2  ;;  %2460 = vmatprep.subr.mxu0 %v1859_v1  ;;  %v1931_v0 = vld [vmem:[%s4278_s4 + $0x808] sm:$0xff] }
 0x317   :  { %2426 = vmatpush3.msra.mxu1 %v1811_v4  ;;  %2461 = vmatpush3.msra.mxu0 %v1843_v6  ;;  %v1883_v4 = vld [vmem:[%s4278_s4 + $0x688] sm:$0xff] }
 0x318   :  { %2427 = vmatprep.subr.mxu1 %v1826_v8  ;;  %2462 = vmatprep.subr.mxu0 %v1858_v9  ;;  %v1915_v6 = vld [vmem:[%s4278_s4 + $0x788] sm:$0xff] }
 0x319   :  { %2428 = vmatpush3.msra.mxu1 %v1810_v10  ;;  %2463 = vmatpush3.msra.mxu0 %v1842_v11  ;;  %v1898_v10 = vld [vmem:[%s4278_s4 + $0x700] sm:$0xff] }
 0x31a   :  { %2429 = vmatprep.subr.mxu1 %v1825_v12  ;;  %2464 = vmatprep.subr.mxu0 %v1857_v28  ;;  %v1930_v11 = vld [vmem:[%s4278_s4 + $0x800] sm:$0xff] }
 0x31b   :  { %2430 = vmatpush3.msra.mxu1 %v1809_v29  ;;  %2465 = vmatpush3.msra.mxu0 %v1841_v13  ;;  %v1882_v12 = vld [vmem:[%s4278_s4 + $0x680] sm:$0xff]  ;;  %v1897_v29 = vld [vmem:[%s4278_s4 + $0x6f8] sm:$0xff] }
 0x31c   :  { %2431 = vmatprep.subr.mxu1 %v1824_v14  ;;  %2466 = vmatprep.subr.mxu0 %v1856_v16  ;;  %v1914_v28 = vld [vmem:[%s4278_s4 + $0x780] sm:$0xff]  ;;  %v1929_v13 = vld [vmem:[%s4278_s4 + $0x7f8] sm:$0xff] }
 0x31d   :  { %2432 = vmatpush3.msra.mxu1 %v1808_v17  ;;  %2467 = vmatpush3.msra.mxu0 %v1840_v18  ;;  %v1881_v14 = vld [vmem:[%s4278_s4 + $0x678] sm:$0xff]  ;;  %v1896_v17 = vld [vmem:[%s4278_s4 + $0x6f0] sm:$0xff] }
 0x31e   :  { %2433 = vmatprep.subr.mxu1 %v1823_v19  ;;  %2468 = vmatprep.subr.mxu0 %v1855_v20  ;;  %v1913_v16 = vld [vmem:[%s4278_s4 + $0x778] sm:$0xff]  ;;  %v1928_v18 = vld [vmem:[%s4278_s4 + $0x7f0] sm:$0xff] }
 0x31f   :  { %2434 = vmatpush3.msra.mxu1 %v1807_v21  ;;  %2469 = vmatpush3.msra.mxu0 %v1839_v22  ;;  %v1880_v19 = vld [vmem:[%s4278_s4 + $0x670] sm:$0xff]  ;;  %v1895_v21 = vld [vmem:[%s4278_s4 + $0x6e8] sm:$0xff] }
 0x320   :  { %2473 = vmatprep.subr.mxu1 %v1902_v23  ;;  %2508 = vmatprep.subr.mxu0 %v1934_v24  ;;  %v1912_v20 = vld [vmem:[%s4278_s4 + $0x770] sm:$0xff]  ;;  %v1927_v22 = vld [vmem:[%s4278_s4 + $0x7e8] sm:$0xff] }
 0x321   :  { %v1879_v23 = vld [vmem:[%s4278_s4 + $0x668] sm:$0xff] }
 0x322   :  { %v1911_v24 = vld [vmem:[%s4278_s4 + $0x768] sm:$0xff] }
 0x3b6   :  { %v1581_v37 = vpop.f32.mrf.mxu1  ;;  %v1652_v38 = vpop.f32.mrf.mxu0 }
 0x3b7   :  { %v1582_v39 = vadd.f32 %v1581_v37, %v1475_v33  ;;  %v1653_v40 = vadd.f32 %v1652_v38, %v1483_v34  ;;  %v1893_v33 = vld [vmem:[%s4278_s4 + $0x6d8] sm:$0xff]  ;;  %v1892_v37 = vld [vmem:[%s4278_s4 + $0x6d0] sm:$0xff] }
 0x3b8   :  { %v1583_v41 = vpop.f32.mrf.mxu1  ;;  %v1654_v42 = vpop.f32.mrf.mxu0  ;;  %v1925_v34 = vld [vmem:[%s4278_s4 + $0x7d8] sm:$0xff]  ;;  %v1924_v38 = vld [vmem:[%s4278_s4 + $0x7d0] sm:$0xff] }
 0x3b9   :  { %v1584_v43 = vadd.f32 %v1583_v41, %v1479_v35  ;;  %v1655_v44 = vadd.f32 %v1654_v42, %v1487_v36  ;;  %v1799_v47 = vmax.f32 %v1582_v39, 0.0  ;;  %v1801_v48 = vmax.f32 %v1653_v40, 0.0  ;;  %v1877_v35 = vld [vmem:[%s4278_s4 + $0x658] sm:$0xff]  ;;  %v1876_v41 = vld [vmem:[%s4278_s4 + $0x650] sm:$0xff] }
 0x3ba   :  { %v1909_v36 = vld [vmem:[%s4278_s4 + $0x758] sm:$0xff]  ;;  %v1490_v39 = vsub.s32 4, %v2939_v15  ;;  %v1498_v40 = vsub.s32 6, %v2939_v15  ;;  %v1908_v42 = vld [vmem:[%s4278_s4 + $0x750] sm:$0xff]  ;;  %v1923_v15 = vld [vmem:[%s4278_s4 + $0x7c8] sm:$0xff] }
 0x3bb   :  { %v1800_v26 = vmax.f32 %v1584_v43, 0.0  ;;  %v1802_v27 = vmax.f32 %v1655_v44, 0.0  ;;  %v1891_v43 = vld [vmem:[%s4278_s4 + $0x6c8] sm:$0xff] }
 0x3bc   :  { %v1875_v44 = vld [vmem:[%s4278_s4 + $0x648] sm:$0xff] }
 0x3bd   :  { %2004 = vmatprep.mubr.f32.mxu1 %v1800_v26  ;;  %2074 = vmatprep.mubr.f32.mxu0 %v1802_v27  ;;  %v1922_v26 = vld [vmem:[%s4278_s4 + $0x7c0] sm:$0xff]  ;;  %v1491_v27 = vrot.slane %v4057_v30, %v1490_v39 }
 0x3be   :  { %2005 = vmatmul.mubr.f32.vlgmr.msra.gmra.mxu1 %v1799_v47  ;;  %2075 = vmatmul.mubr.f32.vlgmr.msra.gmra.mxu0 %v1801_v48  ;;  %v1499_v47 = vrot.slane %v4057_v30, %v1498_v40  ;;  %v1874_v48 = vld [vmem:[%s4278_s4 + $0x640] sm:$0xff]  ;;  %v1921_v30 = vld [vmem:[%s4278_s4 + $0x7b8] sm:$0xff] }
 0x3bf   :  { %v4090_v55 = vpop.f32.mrf.mxu1  ;;  %v4092_v56 = vpop.f32.mrf.mxu0  ;;  %2474 = vmatpush3.msra.mxu1 %v1886_v5  ;;  %2509 = vmatpush3.msra.mxu0 %v1918_v49  ;;  %v1906_v5 = vld [vmem:[%s4278_s4 + $0x740] sm:$0xff]  ;;  %v1889_v49 = vld [vmem:[%s4278_s4 + $0x6b8] sm:$0xff] }
 0x3c0   :  { %2475 = vmatprep.subr.mxu1 %v1901_v50  ;;  %2510 = vmatprep.subr.mxu0 %v1933_v51  ;;  %v1873_v50 = vld [vmem:[%s4278_s4 + $0x638] sm:$0xff] }
 0x3c1   :  { %v1725_v61 = vpop.f32.mrf.mxu1  ;;  %v1796_v62 = vpop.f32.mrf.mxu0  ;;  %2476 = vmatpush3.msra.mxu1 %v1885_v53  ;;  %2511 = vmatpush3.msra.mxu0 %v1917_v54  ;;  %v1905_v51 = vld [vmem:[%s4278_s4 + $0x738] sm:$0xff]  ;;  %v1724_v53 = vadd.f32 %v4090_v55, %v1491_v27  ;;  %v1795_v54 = vadd.f32 %v4092_v56, %v1499_v47  ;;  %v1919_v55 = vld [vmem:[%s4278_s4 + $0x7a8] sm:$0xff] }
 0x3c2   :  { %v1726_v2 = vadd.f32 %v1725_v61, %v1495_v3  ;;  %v1797_v1 = vadd.f32 %v1796_v62, %v1503_v52  ;;  %2477 = vmatprep.subr.mxu1 %v1900_v57  ;;  %2512 = vmatprep.subr.mxu0 %v1932_v58  ;;  %v1888_v3 = vld [vmem:[%s4278_s4 + $0x6b0] sm:$0xff]  ;;  %v1871_v56 = vld [vmem:[%s4278_s4 + $0x628] sm:$0xff] }
 0x3c3   :  { %2478 = vmatpush3.msra.mxu1 %v1884_v59  ;;  %2513 = vmatpush3.msra.mxu0 %v1916_v60  ;;  %v1920_v52 = vld [vmem:[%s4278_s4 + $0x7b0] sm:$0xff]  ;;  %v1887_v59 = vld [vmem:[%s4278_s4 + $0x6a8] sm:$0xff]  ;;  %v1803_v61 = vmax.f32 %v1724_v53, 0.0  ;;  %v1805_v62 = vmax.f32 %v1795_v54, 0.0 }
 0x3c4   :  { %v1804_v8 = vmax.f32 %v1726_v2, 0.0  ;;  %v1806_v9 = vmax.f32 %v1797_v1, 0.0  ;;  %2479 = vmatprep.subr.mxu1 %v1899_v63  ;;  %2514 = vmatprep.subr.mxu0 %v1931_v0  ;;  %v1872_v57 = vld [vmem:[%s4278_s4 + $0x630] sm:$0xff]  ;;  %v1903_v60 = vld [vmem:[%s4278_s4 + $0x728] sm:$0xff] }
 0x3c5   :  { %2480 = vmatpush3.msra.mxu1 %v1883_v4  ;;  %2515 = vmatpush3.msra.mxu0 %v1915_v6  ;;  %v1904_v58 = vld [vmem:[%s4278_s4 + $0x730] sm:$0xff]  ;;  %v2259_v4 = vld [vmem:[%s4278_s4 + $0x82a] ss:$0 sm:$0xff] }
 0x3c6   :  { %2144 = vmatprep.mubr.f32.mxu1 %v1804_v8  ;;  %2214 = vmatprep.mubr.f32.mxu0 %v1806_v9 }
 0x3c7   :  { %2481 = vmatprep.subr.mxu1 %v1898_v10  ;;  %2516 = vmatprep.subr.mxu0 %v1930_v11 }
 0x3c8   :  { %2482 = vmatpush3.msra.mxu1 %v1882_v12  ;;  %2517 = vmatpush3.msra.mxu0 %v1914_v28 }
 0x3c9   :  { %2483 = vmatprep.subr.mxu1 %v1897_v29  ;;  %2518 = vmatprep.subr.mxu0 %v1929_v13 }
 0x3ca   :  { %2484 = vmatpush3.msra.mxu1 %v1881_v14  ;;  %2519 = vmatpush3.msra.mxu0 %v1913_v16 }
 0x3cb   :  { %2485 = vmatprep.subr.mxu1 %v1896_v17  ;;  %2520 = vmatprep.subr.mxu0 %v1928_v18 }
 0x3cc   :  { %2486 = vmatpush3.msra.mxu1 %v1880_v19  ;;  %2521 = vmatpush3.msra.mxu0 %v1912_v20 }
 0x3cd   :  { %2487 = vmatprep.subr.mxu1 %v1895_v21  ;;  %2522 = vmatprep.subr.mxu0 %v1927_v22 }
 0x3ce   :  { %2488 = vmatpush3.msra.mxu1 %v1879_v23  ;;  %2523 = vmatpush3.msra.mxu0 %v1911_v24 }
 0x3cf   :  { %2489 = vmatprep.subr.mxu1 %v1894_v46  ;;  %2524 = vmatprep.subr.mxu0 %v1926_v25 }
 0x3d0   :  { %2490 = vmatpush3.msra.mxu1 %v1878_v31  ;;  %2525 = vmatpush3.msra.mxu0 %v1910_v32 }
 0x3d1   :  { %2491 = vmatprep.subr.mxu1 %v1893_v33  ;;  %2526 = vmatprep.subr.mxu0 %v1925_v34 }
 0x3d2   :  { %2492 = vmatpush3.msra.mxu1 %v1877_v35  ;;  %2527 = vmatpush3.msra.mxu0 %v1909_v36 }
 0x3d3   :  { %2493 = vmatprep.subr.mxu1 %v1892_v37  ;;  %2528 = vmatprep.subr.mxu0 %v1924_v38 }
 0x3d4   :  { %2494 = vmatpush3.msra.mxu1 %v1876_v41  ;;  %2529 = vmatpush3.msra.mxu0 %v1908_v42 }
 0x3d5   :  { %2495 = vmatprep.subr.mxu1 %v1891_v43  ;;  %2530 = vmatprep.subr.mxu0 %v1923_v15 }
 0x3d6   :  { %2496 = vmatpush3.msra.mxu1 %v1875_v44  ;;  %2531 = vmatpush3.msra.mxu0 %v1907_v45 }
 0x3d7   :  { %2497 = vmatprep.subr.mxu1 %v1890_v7  ;;  %2532 = vmatprep.subr.mxu0 %v1922_v26 }
 0x3d8   :  { %2498 = vmatpush3.msra.mxu1 %v1874_v48  ;;  %2533 = vmatpush3.msra.mxu0 %v1906_v5 }
 0x3d9   :  { %2499 = vmatprep.subr.mxu1 %v1889_v49  ;;  %2534 = vmatprep.subr.mxu0 %v1921_v30 }
 0x3da   :  { %2500 = vmatpush3.msra.mxu1 %v1873_v50  ;;  %2535 = vmatpush3.msra.mxu0 %v1905_v51 }
 0x3db   :  { %2501 = vmatprep.subr.mxu1 %v1888_v3  ;;  %2536 = vmatprep.subr.mxu0 %v1920_v52 }
 0x3dc   :  { %2502 = vmatpush3.msra.mxu1 %v1872_v57  ;;  %2537 = vmatpush3.msra.mxu0 %v1904_v58 }
 0x3dd   :  { %2503 = vmatprep.subr.mxu1 %v1887_v59  ;;  %2538 = vmatprep.subr.mxu0 %v1919_v55 }
 0x3de   :  { %2504 = vmatpush3.msra.mxu1 %v1871_v56  ;;  %2539 = vmatpush3.msra.mxu0 %v1903_v60 }
 0x3df   :  { %2145 = vmatmul.mubr.f32.vlgmr.msra.gmra.mxu1 %v1803_v61  ;;  %2215 = vmatmul.mubr.f32.vlgmr.msra.gmra.mxu0 %v1805_v62 }
 0x47e   :  { %v2435_v63 = vpop.f32.mrf.mxu1  ;;  %v2470_v2 = vpop.f32.mrf.mxu0 }
 0x480   :  { %v2436_v0 = vpop.f32.mrf.mxu1  ;;  %v2471_v6 = vpop.f32.mrf.mxu0 }
 0x481   :  { %v2437_v1 = vadd.f32 %v2436_v0, %v2435_v63  ;;  %v2472_v11 = vadd.f32 %v2471_v6, %v2470_v2 }
 0x483   :  { %v2007_v8 = vadd.f32 %v2437_v1, %v2259_v4 }
 0x485   :  { %v2077_v29 = vadd.f32 %v2472_v11, %v2007_v8 }
 0x49f   :  { %v2505_v9 = vpop.f32.mrf.mxu1  ;;  %v2540_v10 = vpop.f32.mrf.mxu0 }
 0x4a1   :  { %v2506_v12 = vpop.f32.mrf.mxu1  ;;  %v2541_v28 = vpop.f32.mrf.mxu0 }
 0x4a2   :  { %v2507_v13 = vadd.f32 %v2506_v12, %v2505_v9  ;;  %v2542_v16 = vadd.f32 %v2541_v28, %v2540_v10 }
 0x4a4   :  { %v2147_v14 = vadd.f32 %v2507_v13, %v2077_v29 }
 0x4a6   :  { %v2217_v17 = vadd.f32 %v2542_v16, %v2147_v14 }
 0x4a8   :  { %v2220_v18 = vmax.f32 %v2217_v17, 0.0 }
 0x4aa   :  { %2222 = vst.msk [vmem:[#allocation2] sm:$0x3] %vm2221_vm11, %v2220_v18 }
 0x4ab   :  { %2853 = shalt.err (!%p2850_p4)
}
 0x4ac   :  { %2232 = dma.vmem_to_hbm [thread:$0]  %s2230_s1, 32, %s4279_s5, [#allocation3]  }
 0x4ad   :  { %2862 = dma.done.wait [#allocation3], 32  }
 0x4ae   :  { %2863 = vsyncadd [#allocation3], 4294967264 }
 0x4af   :  { %2236 = vsyncpa [#allocation3], 1 }

</bundles_post_ra>
